<compile_context>
chip_gen: v7x
topology: tpu7x:2x2x1
jax: 0.10.0
libtpu: 0.0.40
codegen_flags: <defaults>
</compile_context>

<pallas_src>
import jax
import jax.numpy as jnp
from jax import lax
from jax.experimental import pallas as pl
from jax.experimental.pallas import tpu as pltpu

INPUT_SIZE = 28
HIDDEN = 64
NUM_CLASSES = 10
LANE = 128          # padded per-gate width == padded hidden width (1 lane group)


def _lstm_kernel(xp_ref, w_hh_ref, w_out_ref, b_out_ref, out_ref):
    """LSTM recurrence on a precomputed input projection + final Linear.

    xp_ref:    (T, B, 4*LANE)  x_t @ W_ih^T + b_ih + b_hh, gate k lives in
                               lanes [k*LANE, k*LANE+HIDDEN), rest zero.
    w_hh_ref:  (LANE, 4*LANE)  W_hh^T, zero-padded rows/cols.
    w_out_ref: (LANE, LANE)    W_out^T, zero-padded rows/cols.
    b_out_ref: (1, LANE)       b_out, zero-padded.
    out_ref:   (B, LANE)       logits; first NUM_CLASSES lanes are valid.
    """
    T, B, _ = xp_ref.shape

    # Hoist the recurrent weight load out of the loop (stays VMEM/vreg resident).
    w_hh = w_hh_ref[...]

    h0 = jnp.zeros((B, LANE), jnp.float32)
    c0 = jnp.zeros((B, LANE), jnp.float32)

    def step(t, carry):
        h, c = carry
        # Only the hidden->hidden matmul remains on the serial path.
        gates = xp_ref[t] + jnp.dot(h, w_hh, preferred_element_type=jnp.float32)
        # PyTorch gate order: input, forget, cell(g), output.
        # Each slice is a full 128-lane-aligned block -> no lane rotates.
        i_g = jax.nn.sigmoid(gates[:, 0 * LANE:1 * LANE])
        f_g = jax.nn.sigmoid(gates[:, 1 * LANE:2 * LANE])
        g_g = jnp.tanh(gates[:, 2 * LANE:3 * LANE])
        o_g = jax.nn.sigmoid(gates[:, 3 * LANE:4 * LANE])
        c_new = f_g * c + i_g * g_g
        h_new = o_g * jnp.tanh(c_new)
        return (h_new, c_new)

    # T is small and static: fully unroll so adjacent steps interleave in the
    # VLIW bundles (h/c stay register-resident as loop carries).
    h, _ = lax.fori_loop(0, T, step, (h0, c0), unroll=True)

    # Final Linear on the last hidden state; lane-dense (B, 128) store.
    out_ref[...] = (
        jnp.dot(h, w_out_ref[...], preferred_element_type=jnp.float32)
        + b_out_ref[...]
    ).astype(out_ref.dtype)


def _pad_gate_cols(w):
    """(rows, 4*HIDDEN) -> (rows, 4*LANE): gate k in cols [k*LANE, k*LANE+HIDDEN)."""
    rows = w.shape[0]
    w4 = w.reshape(rows, 4, HIDDEN)
    w4 = jnp.pad(w4, ((0, 0), (0, 0), (0, LANE - HIDDEN)))
    return w4.reshape(rows, 4 * LANE)


@jax.jit
def lstm_forward(x, w_ih, w_hh, b_ih, b_hh, w_out, b_out):
    """x: (B, T, D_in) batch-first, like the PyTorch module. Returns (B, 10)."""
    B, T, D = x.shape

    # ---- one-time weight prep (outside the serial recurrence) ----
    w_ih_t = _pad_gate_cols(jnp.transpose(w_ih))                  # (D, 4*LANE)
    b_comb = _pad_gate_cols((b_ih + b_hh).reshape(1, 4 * HIDDEN))  # (1, 4*LANE)
    w_hh_t = _pad_gate_cols(jnp.transpose(w_hh))                  # (H, 4*LANE)
    w_hh_t = jnp.pad(w_hh_t, ((0, LANE - HIDDEN), (0, 0)))        # (LANE, 4*LANE)
    w_out_t = jnp.pad(jnp.transpose(w_out),
                      ((0, LANE - HIDDEN), (0, LANE - NUM_CLASSES)))  # (LANE, LANE)
    b_out_p = jnp.pad(b_out.reshape(1, NUM_CLASSES),
                      ((0, 0), (0, LANE - NUM_CLASSES)))          # (1, LANE)

    # ---- hoisted input projection: one big matmul for all timesteps ----
    xp = x.reshape(B * T, D) @ w_ih_t + b_comb                    # (B*T, 4*LANE)
    xp = xp.reshape(B, T, 4 * LANE).transpose(1, 0, 2)            # (T, B, 4*LANE)

    vmem = pl.BlockSpec(memory_space=pltpu.MemorySpace.VMEM)
    out_pad = pl.pallas_call(
        _lstm_kernel,
        out_shape=jax.ShapeDtypeStruct((B, LANE), jnp.float32),
        in_specs=[vmem] * 4,
        out_specs=vmem,
    )(xp, w_hh_t, w_out_t, b_out_p)
    return out_pad[:, :NUM_CLASSES]


def lstm_forward_ref(x, w_ih, w_hh, b_ih, b_hh, w_out, b_out):
    """Pure-JAX reference reproducing PyTorch LSTM + Linear semantics."""
    B, T, _ = x.shape
    h = jnp.zeros((B, HIDDEN), jnp.float32)
    c = jnp.zeros((B, HIDDEN), jnp.float32)

    def step(carry, x_t):
        h, c = carry
        gates = x_t @ w_ih.T + h @ w_hh.T + b_ih + b_hh
        i_g = jax.nn.sigmoid(gates[:, 0 * HIDDEN:1 * HIDDEN])
        f_g = jax.nn.sigmoid(gates[:, 1 * HIDDEN:2 * HIDDEN])
        g_g = jnp.tanh(gates[:, 2 * HIDDEN:3 * HIDDEN])
        o_g = jax.nn.sigmoid(gates[:, 3 * HIDDEN:4 * HIDDEN])
        c = f_g * c + i_g * g_g
        h = o_g * jnp.tanh(c)
        return (h, c), None

    (h, c), _ = lax.scan(step, (h, c), jnp.transpose(x, (1, 0, 2)))
    return h @ w_out.T + b_out


if __name__ == "__main__":
    key = jax.random.PRNGKey(0)
    B, T = 2, 8   # small seq-length; input feature dim is fixed at 28 by the module

    keys = jax.random.split(key, 8)
    x = jax.random.normal(keys[0], (B, T, INPUT_SIZE), jnp.float32)

    # PyTorch-style init: U(-1/sqrt(H), 1/sqrt(H))
    bound = 1.0 / (HIDDEN ** 0.5)
    u = lambda k, shape: jax.random.uniform(k, shape, jnp.float32, -bound, bound)
    w_ih = u(keys[1], (4 * HIDDEN, INPUT_SIZE))
    w_hh = u(keys[2], (4 * HIDDEN, HIDDEN))
    b_ih = u(keys[3], (4 * HIDDEN,))
    b_hh = u(keys[4], (4 * HIDDEN,))
    w_out = u(keys[5], (NUM_CLASSES, HIDDEN))
    b_out = u(keys[6], (NUM_CLASSES,))

    out = lstm_forward(x, w_ih, w_hh, b_ih, b_hh, w_out, b_out)
    out = jax.block_until_ready(out)

    ref = lstm_forward_ref(x, w_ih, w_hh, b_ih, b_hh, w_out, b_out)
    assert out.shape == (B, NUM_CLASSES)
    assert jnp.allclose(out, ref, atol=1e-4, rtol=1e-4), (
        f"mismatch: max abs err {jnp.max(jnp.abs(out - ref))}")

    print("KERNEL_OK")
</pallas_src>

<mosaic_0001>
module attributes {stable_mosaic.version = 11 : i64} {
  func.func @_lstm_kernel(%arg0: memref<8x2x512xf32, #tpu.memory_space<vmem>>, %arg1: memref<128x512xf32, #tpu.memory_space<vmem>>, %arg2: memref<128x128xf32, #tpu.memory_space<vmem>>, %arg3: memref<1x128xf32, #tpu.memory_space<vmem>>, %arg4: memref<2x128xf32, #tpu.memory_space<vmem>>) attributes {dimension_semantics = [], scalar_prefetch = 0 : i64, scratch_operands = 0 : i64, tpu.core_type = #tpu.core_type<tc>} {
    %c0 = arith.constant 0 : index
    %c0_0 = arith.constant 0 : index
    %0 = vector.load %arg1[%c0, %c0_0] : memref<128x512xf32, #tpu.memory_space<vmem>>, vector<128x512xf32>
    %cst = arith.constant 0.000000e+00 : f32
    %1 = vector.broadcast %cst : f32 to vector<2x128xf32>
    %cst_1 = arith.constant 0.000000e+00 : f32
    %2 = vector.broadcast %cst_1 : f32 to vector<2x128xf32>
    %c0_i32 = arith.constant 0 : i32
    %3 = arith.index_cast %c0_i32 : i32 to index
    %c0_2 = arith.constant 0 : index
    %c0_3 = arith.constant 0 : index
    %4 = vector.load %arg0[%3, %c0_2, %c0_3] : memref<8x2x512xf32, #tpu.memory_space<vmem>>, vector<1x2x512xf32>
    %5 = vector.shape_cast %4 : vector<1x2x512xf32> to vector<2x512xf32>
    %cst_4 = arith.constant dense<0.000000e+00> : vector<2x512xf32>
    %6 = tpu.matmul %1, %0, %cst_4 {dimension_numbers = #tpu.dot_dimension_numbers<[1], [0], [0], [1], [0, 0, 1, 1], [], []>} : vector<2x128xf32>, vector<128x512xf32>, vector<2x512xf32> -> vector<2x512xf32>
    %7 = arith.addf %5, %6 : vector<2x512xf32>
    %8 = vector.extract_strided_slice %7 {offsets = [0, 0], sizes = [2, 128], strides = [1, 1]} : vector<2x512xf32> to vector<2x128xf32>
    %9 = arith.negf %8 : vector<2x128xf32>
    %10 = math.exp %9 : vector<2x128xf32>
    %cst_5 = arith.constant 1.000000e+00 : f32
    %11 = vector.broadcast %cst_5 : f32 to vector<2x128xf32>
    %12 = arith.addf %11, %10 : vector<2x128xf32>
    %13 = arith.divf %11, %12 : vector<2x128xf32>
    %14 = vector.extract_strided_slice %7 {offsets = [0, 128], sizes = [2, 128], strides = [1, 1]} : vector<2x512xf32> to vector<2x128xf32>
    %15 = arith.negf %14 : vector<2x128xf32>
    %16 = math.exp %15 : vector<2x128xf32>
    %cst_6 = arith.constant 1.000000e+00 : f32
    %17 = vector.broadcast %cst_6 : f32 to vector<2x128xf32>
    %18 = arith.addf %17, %16 : vector<2x128xf32>
    %19 = arith.divf %17, %18 : vector<2x128xf32>
    %20 = vector.extract_strided_slice %7 {offsets = [0, 256], sizes = [2, 128], strides = [1, 1]} : vector<2x512xf32> to vector<2x128xf32>
    %21 = math.tanh %20 : vector<2x128xf32>
    %22 = vector.extract_strided_slice %7 {offsets = [0, 384], sizes = [2, 128], strides = [1, 1]} : vector<2x512xf32> to vector<2x128xf32>
    %23 = arith.negf %22 : vector<2x128xf32>
    %24 = math.exp %23 : vector<2x128xf32>
    %cst_7 = arith.constant 1.000000e+00 : f32
    %25 = vector.broadcast %cst_7 : f32 to vector<2x128xf32>
    %26 = arith.addf %25, %24 : vector<2x128xf32>
    %27 = arith.divf %25, %26 : vector<2x128xf32>
    %28 = arith.mulf %19, %2 : vector<2x128xf32>
    %29 = arith.mulf %13, %21 : vector<2x128xf32>
    %30 = arith.addf %28, %29 : vector<2x128xf32>
    %31 = math.tanh %30 : vector<2x128xf32>
    %32 = arith.mulf %27, %31 : vector<2x128xf32>
    %c1_i32 = arith.constant 1 : i32
    %33 = arith.index_cast %c1_i32 : i32 to index
    %c0_8 = arith.constant 0 : index
    %c0_9 = arith.constant 0 : index
    %34 = vector.load %arg0[%33, %c0_8, %c0_9] : memref<8x2x512xf32, #tpu.memory_space<vmem>>, vector<1x2x512xf32>
    %35 = vector.shape_cast %34 : vector<1x2x512xf32> to vector<2x512xf32>
    %cst_10 = arith.constant dense<0.000000e+00> : vector<2x512xf32>
    %36 = tpu.matmul %32, %0, %cst_10 {dimension_numbers = #tpu.dot_dimension_numbers<[1], [0], [0], [1], [0, 0, 1, 1], [], []>} : vector<2x128xf32>, vector<128x512xf32>, vector<2x512xf32> -> vector<2x512xf32>
    %37 = arith.addf %35, %36 : vector<2x512xf32>
    %38 = vector.extract_strided_slice %37 {offsets = [0, 0], sizes = [2, 128], strides = [1, 1]} : vector<2x512xf32> to vector<2x128xf32>
    %39 = arith.negf %38 : vector<2x128xf32>
    %40 = math.exp %39 : vector<2x128xf32>
    %cst_11 = arith.constant 1.000000e+00 : f32
    %41 = vector.broadcast %cst_11 : f32 to vector<2x128xf32>
    %42 = arith.addf %41, %40 : vector<2x128xf32>
    %43 = arith.divf %41, %42 : vector<2x128xf32>
    %44 = vector.extract_strided_slice %37 {offsets = [0, 128], sizes = [2, 128], strides = [1, 1]} : vector<2x512xf32> to vector<2x128xf32>
    %45 = arith.negf %44 : vector<2x128xf32>
    %46 = math.exp %45 : vector<2x128xf32>
    %cst_12 = arith.constant 1.000000e+00 : f32
    %47 = vector.broadcast %cst_12 : f32 to vector<2x128xf32>
    %48 = arith.addf %47, %46 : vector<2x128xf32>
    %49 = arith.divf %47, %48 : vector<2x128xf32>
    %50 = vector.extract_strided_slice %37 {offsets = [0, 256], sizes = [2, 128], strides = [1, 1]} : vector<2x512xf32> to vector<2x128xf32>
    %51 = math.tanh %50 : vector<2x128xf32>
    %52 = vector.extract_strided_slice %37 {offsets = [0, 384], sizes = [2, 128], strides = [1, 1]} : vector<2x512xf32> to vector<2x128xf32>
    %53 = arith.negf %52 : vector<2x128xf32>
    %54 = math.exp %53 : vector<2x128xf32>
    %cst_13 = arith.constant 1.000000e+00 : f32
    %55 = vector.broadcast %cst_13 : f32 to vector<2x128xf32>
    %56 = arith.addf %55, %54 : vector<2x128xf32>
    %57 = arith.divf %55, %56 : vector<2x128xf32>
    %58 = arith.mulf %49, %30 : vector<2x128xf32>
    %59 = arith.mulf %43, %51 : vector<2x128xf32>
    %60 = arith.addf %58, %59 : vector<2x128xf32>
    %61 = math.tanh %60 : vector<2x128xf32>
    %62 = arith.mulf %57, %61 : vector<2x128xf32>
    %c2_i32 = arith.constant 2 : i32
    %63 = arith.index_cast %c2_i32 : i32 to index
    %c0_14 = arith.constant 0 : index
    %c0_15 = arith.constant 0 : index
    %64 = vector.load %arg0[%63, %c0_14, %c0_15] : memref<8x2x512xf32, #tpu.memory_space<vmem>>, vector<1x2x512xf32>
    %65 = vector.shape_cast %64 : vector<1x2x512xf32> to vector<2x512xf32>
    %cst_16 = arith.constant dense<0.000000e+00> : vector<2x512xf32>
    %66 = tpu.matmul %62, %0, %cst_16 {dimension_numbers = #tpu.dot_dimension_numbers<[1], [0], [0], [1], [0, 0, 1, 1], [], []>} : vector<2x128xf32>, vector<128x512xf32>, vector<2x512xf32> -> vector<2x512xf32>
    %67 = arith.addf %65, %66 : vector<2x512xf32>
    %68 = vector.extract_strided_slice %67 {offsets = [0, 0], sizes = [2, 128], strides = [1, 1]} : vector<2x512xf32> to vector<2x128xf32>
    %69 = arith.negf %68 : vector<2x128xf32>
    %70 = math.exp %69 : vector<2x128xf32>
    %cst_17 = arith.constant 1.000000e+00 : f32
    %71 = vector.broadcast %cst_17 : f32 to vector<2x128xf32>
    %72 = arith.addf %71, %70 : vector<2x128xf32>
    %73 = arith.divf %71, %72 : vector<2x128xf32>
    %74 = vector.extract_strided_slice %67 {offsets = [0, 128], sizes = [2, 128], strides = [1, 1]} : vector<2x512xf32> to vector<2x128xf32>
    %75 = arith.negf %74 : vector<2x128xf32>
    %76 = math.exp %75 : vector<2x128xf32>
    %cst_18 = arith.constant 1.000000e+00 : f32
    %77 = vector.broadcast %cst_18 : f32 to vector<2x128xf32>
    %78 = arith.addf %77, %76 : vector<2x128xf32>
    %79 = arith.divf %77, %78 : vector<2x128xf32>
    %80 = vector.extract_strided_slice %67 {offsets = [0, 256], sizes = [2, 128], strides = [1, 1]} : vector<2x512xf32> to vector<2x128xf32>
    %81 = math.tanh %80 : vector<2x128xf32>
    %82 = vector.extract_strided_slice %67 {offsets = [0, 384], sizes = [2, 128], strides = [1, 1]} : vector<2x512xf32> to vector<2x128xf32>
    %83 = arith.negf %82 : vector<2x128xf32>
    %84 = math.exp %83 : vector<2x128xf32>
    %cst_19 = arith.constant 1.000000e+00 : f32
    %85 = vector.broadcast %cst_19 : f32 to vector<2x128xf32>
    %86 = arith.addf %85, %84 : vector<2x128xf32>
    %87 = arith.divf %85, %86 : vector<2x128xf32>
    %88 = arith.mulf %79, %60 : vector<2x128xf32>
    %89 = arith.mulf %73, %81 : vector<2x128xf32>
    %90 = arith.addf %88, %89 : vector<2x128xf32>
    %91 = math.tanh %90 : vector<2x128xf32>
    %92 = arith.mulf %87, %91 : vector<2x128xf32>
    %c3_i32 = arith.constant 3 : i32
    %93 = arith.index_cast %c3_i32 : i32 to index
    %c0_20 = arith.constant 0 : index
    %c0_21 = arith.constant 0 : index
    %94 = vector.load %arg0[%93, %c0_20, %c0_21] : memref<8x2x512xf32, #tpu.memory_space<vmem>>, vector<1x2x512xf32>
    %95 = vector.shape_cast %94 : vector<1x2x512xf32> to vector<2x512xf32>
    %cst_22 = arith.constant dense<0.000000e+00> : vector<2x512xf32>
    %96 = tpu.matmul %92, %0, %cst_22 {dimension_numbers = #tpu.dot_dimension_numbers<[1], [0], [0], [1], [0, 0, 1, 1], [], []>} : vector<2x128xf32>, vector<128x512xf32>, vector<2x512xf32> -> vector<2x512xf32>
    %97 = arith.addf %95, %96 : vector<2x512xf32>
    %98 = vector.extract_strided_slice %97 {offsets = [0, 0], sizes = [2, 128], strides = [1, 1]} : vector<2x512xf32> to vector<2x128xf32>
    %99 = arith.negf %98 : vector<2x128xf32>
    %100 = math.exp %99 : vector<2x128xf32>
    %cst_23 = arith.constant 1.000000e+00 : f32
    %101 = vector.broadcast %cst_23 : f32 to vector<2x128xf32>
    %102 = arith.addf %101, %100 : vector<2x128xf32>
    %103 = arith.divf %101, %102 : vector<2x128xf32>
    %104 = vector.extract_strided_slice %97 {offsets = [0, 128], sizes = [2, 128], strides = [1, 1]} : vector<2x512xf32> to vector<2x128xf32>
    %105 = arith.negf %104 : vector<2x128xf32>
    %106 = math.exp %105 : vector<2x128xf32>
    %cst_24 = arith.constant 1.000000e+00 : f32
    %107 = vector.broadcast %cst_24 : f32 to vector<2x128xf32>
    %108 = arith.addf %107, %106 : vector<2x128xf32>
    %109 = arith.divf %107, %108 : vector<2x128xf32>
    %110 = vector.extract_strided_slice %97 {offsets = [0, 256], sizes = [2, 128], strides = [1, 1]} : vector<2x512xf32> to vector<2x128xf32>
    %111 = math.tanh %110 : vector<2x128xf32>
    %112 = vector.extract_strided_slice %97 {offsets = [0, 384], sizes = [2, 128], strides = [1, 1]} : vector<2x512xf32> to vector<2x128xf32>
    %113 = arith.negf %112 : vector<2x128xf32>
    %114 = math.exp %113 : vector<2x128xf32>
    %cst_25 = arith.constant 1.000000e+00 : f32
    %115 = vector.broadcast %cst_25 : f32 to vector<2x128xf32>
    %116 = arith.addf %115, %114 : vector<2x128xf32>
    %117 = arith.divf %115, %116 : vector<2x128xf32>
    %118 = arith.mulf %109, %90 : vector<2x128xf32>
    %119 = arith.mulf %103, %111 : vector<2x128xf32>
    %120 = arith.addf %118, %119 : vector<2x128xf32>
    %121 = math.tanh %120 : vector<2x128xf32>
    %122 = arith.mulf %117, %121 : vector<2x128xf32>
    %c4_i32 = arith.constant 4 : i32
    %123 = arith.index_cast %c4_i32 : i32 to index
    %c0_26 = arith.constant 0 : index
    %c0_27 = arith.constant 0 : index
    %124 = vector.load %arg0[%123, %c0_26, %c0_27] : memref<8x2x512xf32, #tpu.memory_space<vmem>>, vector<1x2x512xf32>
    %125 = vector.shape_cast %124 : vector<1x2x512xf32> to vector<2x512xf32>
    %cst_28 = arith.constant dense<0.000000e+00> : vector<2x512xf32>
    %126 = tpu.matmul %122, %0, %cst_28 {dimension_numbers = #tpu.dot_dimension_numbers<[1], [0], [0], [1], [0, 0, 1, 1], [], []>} : vector<2x128xf32>, vector<128x512xf32>, vector<2x512xf32> -> vector<2x512xf32>
    %127 = arith.addf %125, %126 : vector<2x512xf32>
    %128 = vector.extract_strided_slice %127 {offsets = [0, 0], sizes = [2, 128], strides = [1, 1]} : vector<2x512xf32> to vector<2x128xf32>
    %129 = arith.negf %128 : vector<2x128xf32>
    %130 = math.exp %129 : vector<2x128xf32>
    %cst_29 = arith.constant 1.000000e+00 : f32
    %131 = vector.broadcast %cst_29 : f32 to vector<2x128xf32>
    %132 = arith.addf %131, %130 : vector<2x128xf32>
    %133 = arith.divf %131, %132 : vector<2x128xf32>
    %134 = vector.extract_strided_slice %127 {offsets = [0, 128], sizes = [2, 128], strides = [1, 1]} : vector<2x512xf32> to vector<2x128xf32>
    %135 = arith.negf %134 : vector<2x128xf32>
    %136 = math.exp %135 : vector<2x128xf32>
    %cst_30 = arith.constant 1.000000e+00 : f32
    %137 = vector.broadcast %cst_30 : f32 to vector<2x128xf32>
    %138 = arith.addf %137, %136 : vector<2x128xf32>
    %139 = arith.divf %137, %138 : vector<2x128xf32>
    %140 = vector.extract_strided_slice %127 {offsets = [0, 256], sizes = [2, 128], strides = [1, 1]} : vector<2x512xf32> to vector<2x128xf32>
    %141 = math.tanh %140 : vector<2x128xf32>
    %142 = vector.extract_strided_slice %127 {offsets = [0, 384], sizes = [2, 128], strides = [1, 1]} : vector<2x512xf32> to vector<2x128xf32>
    %143 = arith.negf %142 : vector<2x128xf32>
    %144 = math.exp %143 : vector<2x128xf32>
    %cst_31 = arith.constant 1.000000e+00 : f32
    %145 = vector.broadcast %cst_31 : f32 to vector<2x128xf32>
    %146 = arith.addf %145, %144 : vector<2x128xf32>
    %147 = arith.divf %145, %146 : vector<2x128xf32>
    %148 = arith.mulf %139, %120 : vector<2x128xf32>
    %149 = arith.mulf %133, %141 : vector<2x128xf32>
    %150 = arith.addf %148, %149 : vector<2x128xf32>
    %151 = math.tanh %150 : vector<2x128xf32>
    %152 = arith.mulf %147, %151 : vector<2x128xf32>
    %c5_i32 = arith.constant 5 : i32
    %153 = arith.index_cast %c5_i32 : i32 to index
    %c0_32 = arith.constant 0 : index
    %c0_33 = arith.constant 0 : index
    %154 = vector.load %arg0[%153, %c0_32, %c0_33] : memref<8x2x512xf32, #tpu.memory_space<vmem>>, vector<1x2x512xf32>
    %155 = vector.shape_cast %154 : vector<1x2x512xf32> to vector<2x512xf32>
    %cst_34 = arith.constant dense<0.000000e+00> : vector<2x512xf32>
    %156 = tpu.matmul %152, %0, %cst_34 {dimension_numbers = #tpu.dot_dimension_numbers<[1], [0], [0], [1], [0, 0, 1, 1], [], []>} : vector<2x128xf32>, vector<128x512xf32>, vector<2x512xf32> -> vector<2x512xf32>
    %157 = arith.addf %155, %156 : vector<2x512xf32>
    %158 = vector.extract_strided_slice %157 {offsets = [0, 0], sizes = [2, 128], strides = [1, 1]} : vector<2x512xf32> to vector<2x128xf32>
    %159 = arith.negf %158 : vector<2x128xf32>
    %160 = math.exp %159 : vector<2x128xf32>
    %cst_35 = arith.constant 1.000000e+00 : f32
    %161 = vector.broadcast %cst_35 : f32 to vector<2x128xf32>
    %162 = arith.addf %161, %160 : vector<2x128xf32>
    %163 = arith.divf %161, %162 : vector<2x128xf32>
    %164 = vector.extract_strided_slice %157 {offsets = [0, 128], sizes = [2, 128], strides = [1, 1]} : vector<2x512xf32> to vector<2x128xf32>
    %165 = arith.negf %164 : vector<2x128xf32>
    %166 = math.exp %165 : vector<2x128xf32>
    %cst_36 = arith.constant 1.000000e+00 : f32
    %167 = vector.broadcast %cst_36 : f32 to vector<2x128xf32>
    %168 = arith.addf %167, %166 : vector<2x128xf32>
    %169 = arith.divf %167, %168 : vector<2x128xf32>
    %170 = vector.extract_strided_slice %157 {offsets = [0, 256], sizes = [2, 128], strides = [1, 1]} : vector<2x512xf32> to vector<2x128xf32>
    %171 = math.tanh %170 : vector<2x128xf32>
    %172 = vector.extract_strided_slice %157 {offsets = [0, 384], sizes = [2, 128], strides = [1, 1]} : vector<2x512xf32> to vector<2x128xf32>
    %173 = arith.negf %172 : vector<2x128xf32>
    %174 = math.exp %173 : vector<2x128xf32>
    %cst_37 = arith.constant 1.000000e+00 : f32
    %175 = vector.broadcast %cst_37 : f32 to vector<2x128xf32>
    %176 = arith.addf %175, %174 : vector<2x128xf32>
    %177 = arith.divf %175, %176 : vector<2x128xf32>
    %178 = arith.mulf %169, %150 : vector<2x128xf32>
    %179 = arith.mulf %163, %171 : vector<2x128xf32>
    %180 = arith.addf %178, %179 : vector<2x128xf32>
    %181 = math.tanh %180 : vector<2x128xf32>
    %182 = arith.mulf %177, %181 : vector<2x128xf32>
    %c6_i32 = arith.constant 6 : i32
    %183 = arith.index_cast %c6_i32 : i32 to index
    %c0_38 = arith.constant 0 : index
    %c0_39 = arith.constant 0 : index
    %184 = vector.load %arg0[%183, %c0_38, %c0_39] : memref<8x2x512xf32, #tpu.memory_space<vmem>>, vector<1x2x512xf32>
    %185 = vector.shape_cast %184 : vector<1x2x512xf32> to vector<2x512xf32>
    %cst_40 = arith.constant dense<0.000000e+00> : vector<2x512xf32>
    %186 = tpu.matmul %182, %0, %cst_40 {dimension_numbers = #tpu.dot_dimension_numbers<[1], [0], [0], [1], [0, 0, 1, 1], [], []>} : vector<2x128xf32>, vector<128x512xf32>, vector<2x512xf32> -> vector<2x512xf32>
    %187 = arith.addf %185, %186 : vector<2x512xf32>
    %188 = vector.extract_strided_slice %187 {offsets = [0, 0], sizes = [2, 128], strides = [1, 1]} : vector<2x512xf32> to vector<2x128xf32>
    %189 = arith.negf %188 : vector<2x128xf32>
    %190 = math.exp %189 : vector<2x128xf32>
    %cst_41 = arith.constant 1.000000e+00 : f32
    %191 = vector.broadcast %cst_41 : f32 to vector<2x128xf32>
    %192 = arith.addf %191, %190 : vector<2x128xf32>
    %193 = arith.divf %191, %192 : vector<2x128xf32>
    %194 = vector.extract_strided_slice %187 {offsets = [0, 128], sizes = [2, 128], strides = [1, 1]} : vector<2x512xf32> to vector<2x128xf32>
    %195 = arith.negf %194 : vector<2x128xf32>
    %196 = math.exp %195 : vector<2x128xf32>
    %cst_42 = arith.constant 1.000000e+00 : f32
    %197 = vector.broadcast %cst_42 : f32 to vector<2x128xf32>
    %198 = arith.addf %197, %196 : vector<2x128xf32>
    %199 = arith.divf %197, %198 : vector<2x128xf32>
    %200 = vector.extract_strided_slice %187 {offsets = [0, 256], sizes = [2, 128], strides = [1, 1]} : vector<2x512xf32> to vector<2x128xf32>
    %201 = math.tanh %200 : vector<2x128xf32>
    %202 = vector.extract_strided_slice %187 {offsets = [0, 384], sizes = [2, 128], strides = [1, 1]} : vector<2x512xf32> to vector<2x128xf32>
    %203 = arith.negf %202 : vector<2x128xf32>
    %204 = math.exp %203 : vector<2x128xf32>
    %cst_43 = arith.constant 1.000000e+00 : f32
    %205 = vector.broadcast %cst_43 : f32 to vector<2x128xf32>
    %206 = arith.addf %205, %204 : vector<2x128xf32>
    %207 = arith.divf %205, %206 : vector<2x128xf32>
    %208 = arith.mulf %199, %180 : vector<2x128xf32>
    %209 = arith.mulf %193, %201 : vector<2x128xf32>
    %210 = arith.addf %208, %209 : vector<2x128xf32>
    %211 = math.tanh %210 : vector<2x128xf32>
    %212 = arith.mulf %207, %211 : vector<2x128xf32>
    %c7_i32 = arith.constant 7 : i32
    %213 = arith.index_cast %c7_i32 : i32 to index
    %c0_44 = arith.constant 0 : index
    %c0_45 = arith.constant 0 : index
    %214 = vector.load %arg0[%213, %c0_44, %c0_45] : memref<8x2x512xf32, #tpu.memory_space<vmem>>, vector<1x2x512xf32>
    %215 = vector.shape_cast %214 : vector<1x2x512xf32> to vector<2x512xf32>
    %cst_46 = arith.constant dense<0.000000e+00> : vector<2x512xf32>
    %216 = tpu.matmul %212, %0, %cst_46 {dimension_numbers = #tpu.dot_dimension_numbers<[1], [0], [0], [1], [0, 0, 1, 1], [], []>} : vector<2x128xf32>, vector<128x512xf32>, vector<2x512xf32> -> vector<2x512xf32>
    %217 = arith.addf %215, %216 : vector<2x512xf32>
    %218 = vector.extract_strided_slice %217 {offsets = [0, 0], sizes = [2, 128], strides = [1, 1]} : vector<2x512xf32> to vector<2x128xf32>
    %219 = arith.negf %218 : vector<2x128xf32>
    %220 = math.exp %219 : vector<2x128xf32>
    %cst_47 = arith.constant 1.000000e+00 : f32
    %221 = vector.broadcast %cst_47 : f32 to vector<2x128xf32>
    %222 = arith.addf %221, %220 : vector<2x128xf32>
    %223 = arith.divf %221, %222 : vector<2x128xf32>
    %224 = vector.extract_strided_slice %217 {offsets = [0, 128], sizes = [2, 128], strides = [1, 1]} : vector<2x512xf32> to vector<2x128xf32>
    %225 = arith.negf %224 : vector<2x128xf32>
    %226 = math.exp %225 : vector<2x128xf32>
    %cst_48 = arith.constant 1.000000e+00 : f32
    %227 = vector.broadcast %cst_48 : f32 to vector<2x128xf32>
    %228 = arith.addf %227, %226 : vector<2x128xf32>
    %229 = arith.divf %227, %228 : vector<2x128xf32>
    %230 = vector.extract_strided_slice %217 {offsets = [0, 256], sizes = [2, 128], strides = [1, 1]} : vector<2x512xf32> to vector<2x128xf32>
    %231 = math.tanh %230 : vector<2x128xf32>
    %232 = vector.extract_strided_slice %217 {offsets = [0, 384], sizes = [2, 128], strides = [1, 1]} : vector<2x512xf32> to vector<2x128xf32>
    %233 = arith.negf %232 : vector<2x128xf32>
    %234 = math.exp %233 : vector<2x128xf32>
    %cst_49 = arith.constant 1.000000e+00 : f32
    %235 = vector.broadcast %cst_49 : f32 to vector<2x128xf32>
    %236 = arith.addf %235, %234 : vector<2x128xf32>
    %237 = arith.divf %235, %236 : vector<2x128xf32>
    %238 = arith.mulf %229, %210 : vector<2x128xf32>
    %239 = arith.mulf %223, %231 : vector<2x128xf32>
    %240 = arith.addf %238, %239 : vector<2x128xf32>
    %241 = math.tanh %240 : vector<2x128xf32>
    %242 = arith.mulf %237, %241 : vector<2x128xf32>
    %c8_i32 = arith.constant 8 : i32
    %c0_50 = arith.constant 0 : index
    %c0_51 = arith.constant 0 : index
    %243 = vector.load %arg2[%c0_50, %c0_51] : memref<128x128xf32, #tpu.memory_space<vmem>>, vector<128x128xf32>
    %cst_52 = arith.constant dense<0.000000e+00> : vector<2x128xf32>
    %244 = tpu.matmul %242, %243, %cst_52 {dimension_numbers = #tpu.dot_dimension_numbers<[1], [0], [0], [1], [0, 0, 1, 1], [], []>} : vector<2x128xf32>, vector<128x128xf32>, vector<2x128xf32> -> vector<2x128xf32>
    %c0_53 = arith.constant 0 : index
    %c0_54 = arith.constant 0 : index
    %245 = vector.load %arg3[%c0_53, %c0_54] : memref<1x128xf32, #tpu.memory_space<vmem>>, vector<1x128xf32>
    %246 = vector.broadcast %245 : vector<1x128xf32> to vector<2x128xf32>
    %247 = arith.addf %244, %246 : vector<2x128xf32>
    %c0_55 = arith.constant 0 : index
    %c0_56 = arith.constant 0 : index
    %248 = vector.load %arg4[%c0_55, %c0_56] : memref<2x128xf32, #tpu.memory_space<vmem>>, vector<2x128xf32>
    tpu.vector_store %arg4[%c0_55, %c0_56], %247 {strides = array<i32>} : memref<2x128xf32, #tpu.memory_space<vmem>>, vector<2x128xf32>,
    return
  }
}

</mosaic_0001>

<bundles_post_ra>
// kernel: lstm_forward.1
= control target key start
LH: loop header
LB: loop body
LE: loop exit
PB: predicated region body
PF: predicated region fallthrough
CT: control target
= control target key end

     0   :  { %v2550_v7 = vmov 0.0   ;;  %s3244_s0 = inlined_call_operand.vmem [shape: f32[8,2,512], index: 0, kind: input, shape index: {}]   ;;  %s3245_s1 = inlined_call_operand.vmem [shape: f32[128,512], index: 1, kind: input, shape index: {}]   ;;  %s3246_s2 = inlined_call_operand.vmem [shape: f32[128,128], index: 2, kind: input, shape index: {}]   ;;  %s3247_s3 = inlined_call_operand.vmem [shape: f32[1,128], index: 3, kind: input, shape index: {}]   ;;  %s3248_s4 = inlined_call_operand.hbm [shape: f32[2,128], index: 4, kind: output, shape index: {}]  }
   0x1   :  { %v19_v0 = vld [vmem:[%s3245_s1 + $0x8] sm:$0xff]  ;;  %v21_v2 = vld [vmem:[%s3245_s1 + $0x18] sm:$0xff]  ;;  %v18_v5 = vld [vmem:[%s3245_s1] sm:$0xff]  ;;  %147 = vmatprep.mubr.f32.mxu0 %v2550_v7  ;;  %218 = vmatprep.mubr.f32.mxu1 %v2550_v7 }
   0x2   :  { %v23_v1 = vld [vmem:[%s3245_s1 + $0x28] sm:$0xff]  ;;  %v25_v4 = vld [vmem:[%s3245_s1 + $0x38] sm:$0xff]  ;;  %v22_v6 = vld [vmem:[%s3245_s1 + $0x20] sm:$0xff] }
   0x3   :  { %v2589_v3 = vpack.c.bf16 %v23_v1, %v19_v0  ;;  %v2602_v8 = vpack.c.bf16 %v25_v4, %v21_v2  ;;  %v2604_v9 = vpack.c.bf16 %v22_v6, %v18_v5  ;;  %v20_v10 = vld [vmem:[%s3245_s1 + $0x10] sm:$0xff]  ;;  %v27_v12 = vld [vmem:[%s3245_s1 + $0x48] sm:$0xff]  ;;  %v29_v15 = vld [vmem:[%s3245_s1 + $0x58] sm:$0xff] }
   0x4   :  { %v24_v11 = vld [vmem:[%s3245_s1 + $0x30] sm:$0xff]  ;;  %v31_v14 = vld [vmem:[%s3245_s1 + $0x68] sm:$0xff]  ;;  %v33_v16 = vld [vmem:[%s3245_s1 + $0x78] sm:$0xff] }
   0x5   :  { %1858 = vmatprep.subr.bf16.mxu0 %v2589_v3  ;;  %v2616_v13 = vpack.c.bf16 %v24_v11, %v20_v10  ;;  %1890 = vmatprep.subr.bf16.mxu1 %v2602_v8  ;;  %v2629_v17 = vpack.c.bf16 %v31_v14, %v27_v12  ;;  %v2631_v18 = vpack.c.bf16 %v33_v16, %v29_v15  ;;  %v26_v19 = vld [vmem:[%s3245_s1 + $0x40] sm:$0xff]  ;;  %v28_v21 = vld [vmem:[%s3245_s1 + $0x50] sm:$0xff]  ;;  %v35_v24 = vld [vmem:[%s3245_s1 + $0x88] sm:$0xff] }
   0x6   :  { %1860 = vmatpush1.bf16.msra.mxu0 %v2604_v9  ;;  %v30_v20 = vld [vmem:[%s3245_s1 + $0x60] sm:$0xff]  ;;  %v32_v23 = vld [vmem:[%s3245_s1 + $0x70] sm:$0xff]  ;;  %v39_v25 = vld [vmem:[%s3245_s1 + $0xa8] sm:$0xff] }
   0x7   :  { %1892 = vmatpush1.bf16.msra.mxu1 %v2616_v13  ;;  %v2643_v22 = vpack.c.bf16 %v30_v20, %v26_v19  ;;  %1862 = vmatprep.subr.bf16.mxu0 %v2629_v17  ;;  %v2656_v26 = vpack.c.bf16 %v32_v23, %v28_v21  ;;  %v2658_v27 = vpack.c.bf16 %v39_v25, %v35_v24  ;;  %v37_v28 = vld [vmem:[%s3245_s1 + $0x98] sm:$0xff]  ;;  %v34_v30 = vld [vmem:[%s3245_s1 + $0x80] sm:$0xff]  ;;  %v36_v33 = vld [vmem:[%s3245_s1 + $0x90] sm:$0xff] }
   0x8   :  { %1894 = vmatprep.subr.bf16.mxu1 %v2631_v18  ;;  %v41_v29 = vld [vmem:[%s3245_s1 + $0xb8] sm:$0xff]  ;;  %v38_v32 = vld [vmem:[%s3245_s1 + $0xa0] sm:$0xff]  ;;  %v40_v34 = vld [vmem:[%s3245_s1 + $0xb0] sm:$0xff] }
   0x9   :  { %v2669_v31 = vpack.c.bf16 %v41_v29, %v37_v28  ;;  %v2681_v35 = vpack.c.bf16 %v38_v32, %v34_v30  ;;  %v43_v36 = vld [vmem:[%s3245_s1 + $0xc8] sm:$0xff]  ;;  %v45_v38 = vld [vmem:[%s3245_s1 + $0xd8] sm:$0xff]  ;;  %v2694_v39 = vpack.c.bf16 %v40_v34, %v36_v33  ;;  %v42_v42 = vld [vmem:[%s3245_s1 + $0xc0] sm:$0xff] }
   0xa   :  { %1864 = vmatpush1.bf16.msra.mxu0 %v2643_v22  ;;  %v47_v37 = vld [vmem:[%s3245_s1 + $0xe8] sm:$0xff]  ;;  %v49_v41 = vld [vmem:[%s3245_s1 + $0xf8] sm:$0xff]  ;;  %v46_v43 = vld [vmem:[%s3245_s1 + $0xe0] sm:$0xff] }
   0xb   :  { %1896 = vmatpush1.bf16.msra.mxu1 %v2656_v26  ;;  %1866 = vmatprep.subr.bf16.mxu0 %v2658_v27  ;;  %v2696_v40 = vpack.c.bf16 %v47_v37, %v43_v36  ;;  %v2708_v44 = vpack.c.bf16 %v49_v41, %v45_v38  ;;  %v44_v45 = vld [vmem:[%s3245_s1 + $0xd0] sm:$0xff]  ;;  %v51_v47 = vld [vmem:[%s3245_s1 + $0x108] sm:$0xff]  ;;  %v53_v49 = vld [vmem:[%s3245_s1 + $0x118] sm:$0xff]  ;;  %v2729_v51 = vpack.c.bf16 %v46_v43, %v42_v42 }
   0xc   :  { %1898 = vmatprep.subr.bf16.mxu1 %v2669_v31  ;;  %v48_v46 = vld [vmem:[%s3245_s1 + $0xf0] sm:$0xff]  ;;  %v55_v48 = vld [vmem:[%s3245_s1 + $0x128] sm:$0xff]  ;;  %v57_v50 = vld [vmem:[%s3245_s1 + $0x138] sm:$0xff] }
   0xd   :  { %v2733_v52 = vpack.c.bf16 %v48_v46, %v44_v45  ;;  %v2735_v53 = vpack.c.bf16 %v55_v48, %v51_v47  ;;  %v50_v54 = vld [vmem:[%s3245_s1 + $0x100] sm:$0xff]  ;;  %v52_v56 = vld [vmem:[%s3245_s1 + $0x110] sm:$0xff]  ;;  %v2747_v57 = vpack.c.bf16 %v57_v50, %v53_v49  ;;  %v59_v59 = vld [vmem:[%s3245_s1 + $0x148] sm:$0xff] }
   0xe   :  { %1868 = vmatpush1.bf16.msra.mxu0 %v2681_v35  ;;  %v54_v55 = vld [vmem:[%s3245_s1 + $0x120] sm:$0xff]  ;;  %v56_v58 = vld [vmem:[%s3245_s1 + $0x130] sm:$0xff]  ;;  %v63_v60 = vld [vmem:[%s3245_s1 + $0x168] sm:$0xff] }
   0xf   :  { %1900 = vmatpush1.bf16.msra.mxu1 %v2694_v39  ;;  %1870 = vmatprep.subr.bf16.mxu0 %v2696_v40  ;;  %v61_v61 = vld [vmem:[%s3245_s1 + $0x158] sm:$0xff]  ;;  %v2765_v63 = vpack.c.bf16 %v54_v55, %v50_v54  ;;  %v2769_v0 = vpack.c.bf16 %v56_v58, %v52_v56  ;;  %v2771_v1 = vpack.c.bf16 %v63_v60, %v59_v59  ;;  %v58_v2 = vld [vmem:[%s3245_s1 + $0x140] sm:$0xff]  ;;  %v60_v5 = vld [vmem:[%s3245_s1 + $0x150] sm:$0xff] }
  0x10   :  { %1902 = vmatprep.subr.bf16.mxu1 %v2708_v44  ;;  %v65_v62 = vld [vmem:[%s3245_s1 + $0x178] sm:$0xff]  ;;  %v62_v4 = vld [vmem:[%s3245_s1 + $0x160] sm:$0xff]  ;;  %v64_v10 = vld [vmem:[%s3245_s1 + $0x170] sm:$0xff] }
  0x11   :  { %v2783_v6 = vpack.c.bf16 %v65_v62, %v61_v61  ;;  %v67_v11 = vld [vmem:[%s3245_s1 + $0x188] sm:$0xff]  ;;  %v69_v14 = vld [vmem:[%s3245_s1 + $0x198] sm:$0xff]  ;;  %v2801_v16 = vpack.c.bf16 %v62_v4, %v58_v2  ;;  %v66_v19 = vld [vmem:[%s3245_s1 + $0x180] sm:$0xff]  ;;  %v2808_v20 = vpack.c.bf16 %v64_v10, %v60_v5 }
  0x12   :  { %1872 = vmatpush1.bf16.msra.mxu0 %v2729_v51  ;;  %v71_v12 = vld [vmem:[%s3245_s1 + $0x1a8] sm:$0xff]  ;;  %v73_v15 = vld [vmem:[%s3245_s1 + $0x1b8] sm:$0xff]  ;;  %v70_v23 = vld [vmem:[%s3245_s1 + $0x1a0] sm:$0xff] }
  0x13   :  { %1904 = vmatpush1.bf16.msra.mxu1 %v2733_v52  ;;  %1874 = vmatprep.subr.bf16.mxu0 %v2735_v53  ;;  %v2810_v21 = vpack.c.bf16 %v71_v12, %v67_v11  ;;  %v68_v24 = vld [vmem:[%s3245_s1 + $0x190] sm:$0xff] }
  0x14   :  { %1906 = vmatprep.subr.bf16.mxu1 %v2747_v57 }
  0x16   :  { %1876 = vmatpush1.bf16.msra.mxu0 %v2765_v63 }
  0x17   :  { %1908 = vmatpush1.bf16.msra.mxu1 %v2769_v0  ;;  %1878 = vmatprep.subr.bf16.mxu0 %v2771_v1 }
  0x18   :  { %9 = vsyncpa [#allocation3], 0  ;;  %1910 = vmatprep.subr.bf16.mxu1 %v2783_v6  ;;  %v2819_v25 = vpack.c.bf16 %v73_v15, %v69_v14  ;;  %v72_v28 = vld [vmem:[%s3245_s1 + $0x1b0] sm:$0xff]  ;;  %v75_v29 = vld [vmem:[%s3245_s1 + $0x1c8] sm:$0xff]  ;;  %v2837_v34 = vpack.c.bf16 %v70_v23, %v66_v19  ;;  %v2551_v48 = vmov 1983009808   ;;  %v234_v50 = vlaneseq }
  0x19   :  { %v79_v30 = vld [vmem:[%s3245_s1 + $0x1e8] sm:$0xff]  ;;  %v77_v32 = vld [vmem:[%s3245_s1 + $0x1d8] sm:$0xff]  ;;  %v2841_v36 = vpack.c.bf16 %v72_v28, %v68_v24  ;;  %v74_v38 = vld [vmem:[%s3245_s1 + $0x1c0] sm:$0xff]  ;;  %v232_v49 = vunpack.c.l.s4 %v2551_v48  ;;  %vm2553_vm0 = vmmov 0   ;;  %s2554_s7 = smov [#allocation2]  }
  0x1a   :  { %v81_v33 = vld [vmem:[%s3245_s1 + $0x1f8] sm:$0xff]  ;;  %1880 = vmatpush1.bf16.msra.mxu0 %v2801_v16  ;;  %v2843_v37 = vpack.c.bf16 %v79_v30, %v75_v29  ;;  %v78_v41 = vld [vmem:[%s3245_s1 + $0x1e0] sm:$0xff]  ;;  %v76_v43 = vld [vmem:[%s3245_s1 + $0x1d0] sm:$0xff]  ;;  %v235_v55 = vshrl.u32 %v234_v50, 7  ;;  %s1765_s8 = sshll.u32 %s2554_s7, 4  ;;  %s1766_s8 = int_to_ptr.vmem [resolvable:$true] %s1765_s8 }
  0x1b   :  { %1912 = vmatpush1.bf16.msra.mxu1 %v2808_v20  ;;  %1882 = vmatprep.subr.bf16.mxu0 %v2810_v21  ;;  %v2852_v42 = vpack.c.bf16 %v81_v33, %v77_v32  ;;  %v80_v45 = vld [vmem:[%s3245_s1 + $0x1f0] sm:$0xff]  ;;  %v2861_v46 = vpack.c.bf16 %v78_v41, %v74_v38  ;;  %v233_v54 = vunpack.c.0.s8 %v232_v49  ;;  %v82_v10 = vld [vmem:[%s3244_s0] sm:$0xff]  ;;  %s2526_s9 = scalar_lea.vmem %s1766_s8, 32  ;;  %p2531_p1 = scmp.lt.s32.totalorder %s1766_s8, %s1766_s8 }
  0x1c   :  { %1914 = vmatprep.subr.bf16.mxu1 %v2819_v25  ;;  %v2865_v47 = vpack.c.bf16 %v80_v45, %v76_v43  ;;  %p2527_p0 = scmp.ne.s32.totalorder %s1766_s8, %s2526_s9  ;;  %p2532_p2 = scmp.lt.s32.totalorder %s2526_s9, %s2526_s9 }
  0x1d   :  { %v2908_v58 = vsub.s32 %v233_v54, %v235_v55 }
  0x1e   :  { %1884 = vmatpush1.bf16.msra.mxu0 %v2837_v34  ;;  %p2533_p3 = por %p2532_p2, %p2531_p1 }
  0x1f   :  { %1916 = vmatpush1.bf16.msra.mxu1 %v2841_v36  ;;  %1886 = vmatprep.subr.bf16.mxu0 %v2843_v37 }
  0x20   :  { %1918 = vmatprep.subr.bf16.mxu1 %v2852_v42  ;;  %p2534_p4 = pnand %p2533_p3, %p2527_p0 }
  0x22   :  { %1888 = vmatpush1.bf16.msra.mxu0 %v2861_v46 }
  0x23   :  { %1920 = vmatpush1.bf16.msra.mxu1 %v2865_v47  ;;  %1922 = vmatprep.subr.bf16.mxu0 %v2589_v3 }
  0x24   :  { %1954 = vmatprep.subr.bf16.mxu1 %v2602_v8 }
  0x25   :  { %148 = vmatmul.mubr.f32.vlgmr.msra.gmra.mrb[0].mxu0 %v2550_v7 }
  0x26   :  { %219 = vmatmul.mubr.f32.vlgmr.msra.gmra.mrb[0].mxu1 %v2550_v7  ;;  %1924 = vmatpush1.bf16.msra.mxu0 %v2604_v9 }
  0x27   :  { %1956 = vmatpush1.bf16.msra.mxu1 %v2616_v13  ;;  %1926 = vmatprep.subr.bf16.mxu0 %v2629_v17 }
  0x28   :  { %1958 = vmatprep.subr.bf16.mxu1 %v2631_v18  ;;  %345 = vmatprep.mubr.f32.mxu0 %v2550_v7 }
  0x29   :  { %416 = vmatprep.mubr.f32.mxu1 %v2550_v7 }
  0x2a   :  { %1928 = vmatpush1.bf16.msra.mxu0 %v2643_v22 }
  0x2b   :  { %1960 = vmatpush1.bf16.msra.mxu1 %v2656_v26  ;;  %1930 = vmatprep.subr.bf16.mxu0 %v2658_v27 }
  0x2c   :  { %1962 = vmatprep.subr.bf16.mxu1 %v2669_v31 }
  0x2e   :  { %1932 = vmatpush1.bf16.msra.mxu0 %v2681_v35 }
  0x2f   :  { %1964 = vmatpush1.bf16.msra.mxu1 %v2694_v39  ;;  %1934 = vmatprep.subr.bf16.mxu0 %v2696_v40 }
  0x30   :  { %1966 = vmatprep.subr.bf16.mxu1 %v2708_v44 }
  0x32   :  { %1936 = vmatpush1.bf16.msra.mxu0 %v2729_v51 }
  0x33   :  { %1968 = vmatpush1.bf16.msra.mxu1 %v2733_v52  ;;  %1938 = vmatprep.subr.bf16.mxu0 %v2735_v53 }
  0x34   :  { %1970 = vmatprep.subr.bf16.mxu1 %v2747_v57 }
  0x36   :  { %1940 = vmatpush1.bf16.msra.mxu0 %v2765_v63 }
  0x37   :  { %1972 = vmatpush1.bf16.msra.mxu1 %v2769_v0  ;;  %1942 = vmatprep.subr.bf16.mxu0 %v2771_v1 }
  0x38   :  { %1974 = vmatprep.subr.bf16.mxu1 %v2783_v6 }
  0x3a   :  { %1944 = vmatpush1.bf16.msra.mxu0 %v2801_v16 }
  0x3b   :  { %1976 = vmatpush1.bf16.msra.mxu1 %v2808_v20  ;;  %1946 = vmatprep.subr.bf16.mxu0 %v2810_v21 }
  0x3c   :  { %1978 = vmatprep.subr.bf16.mxu1 %v2819_v25 }
  0x3e   :  { %1948 = vmatpush1.bf16.msra.mxu0 %v2837_v34 }
  0x3f   :  { %1980 = vmatpush1.bf16.msra.mxu1 %v2841_v36  ;;  %1950 = vmatprep.subr.bf16.mxu0 %v2843_v37 }
  0x40   :  { %1982 = vmatprep.subr.bf16.mxu1 %v2852_v42 }
  0x42   :  { %1952 = vmatpush1.bf16.msra.mxu0 %v2861_v46 }
  0x43   :  { %1984 = vmatpush1.bf16.msra.mxu1 %v2865_v47  ;;  %1986 = vmatprep.subr.bf16.mxu0 %v2589_v3 }
  0x44   :  { %2018 = vmatprep.subr.bf16.mxu1 %v2602_v8 }
  0xf8   :  { %v149_v56 = vpop.f32.mrb[0].mxu0 }
  0xf9   :  { %v220_v59 = vpop.f32.mrb[0].mxu1  ;;  %v151_v60 = vpop.f32.mrb[1].mxu0 }
  0xfa   :  { %v229_v61 = vcombine.low %v149_v56, %v151_v60  ;;  %v222_v62 = vpop.f32.mrb[1].mxu1 }
  0xfb   :  { %v230_v2 = vcombine.low %v220_v59, %v222_v62 }
  0xfc   :  { %v237_v4 = vrot.slane %v229_v61, %v2908_v58 }
  0xfd   :  { %v244_v5 = vrot.slane %v230_v2, %v2908_v58 }
  0xff   :  { %v245_v11 = vcombine.low %v237_v4, %v244_v5 }
 0x101   :  { %v247_v12 = vadd.f32 %v245_v11, %v82_v10 }
 0x103   :  { %v1773_v14 = vmul.f32 -1.442695, %v247_v12  ;;  %v255_v15 = vrot.slane %v247_v12, 2  ;;  %v266_v23 = vrot.slane %v247_v12, 6  ;;  %v263_v29 = vrot.slane %v247_v12, 4  ;;  %v1776_v12 = vld [vmem:[%s3244_s0 + $0x8] sm:$0xff] }
 0x105   :  { %2398 = vpow2.f32 %v1773_v14  ;;  %v1774_v19 = vmul.f32 -1.442695, %v255_v15  ;;  %v1775_v24 = vmul.f32 -1.442695, %v266_v23 }
 0x107   :  { %2400 = vpow2.f32 %v1774_v19 }
 0x108   :  { %2402 = vpow2.f32 %v1775_v24 }
 0x10f   :  { %v2399_v28 = vpop.eup %2398 }
 0x110   :  { %v251_v30 = vadd.f32 1.0, %v2399_v28 }
 0x111   :  { %v2401_v32 = vpop.eup %2400 }
 0x112   :  { %2404 = vrcp.f32 %v251_v30  ;;  %v260_v33 = vadd.f32 1.0, %v2401_v32  ;;  %v2403_v38 = vpop.eup %2402 }
 0x113   :  { %2406 = vtanh.f32 %v263_v29  ;;  %v271_v48 = vadd.f32 1.0, %v2403_v38 }
 0x114   :  { %2408 = vrcp.f32 %v260_v33 }
 0x115   :  { %2410 = vrcp.f32 %v271_v48 }
 0x11c   :  { %v2405_v41 = vpop.eup %2404 }
 0x11d   :  { %v2407_v43 = vpop.eup %2406 }
 0x11e   :  { %v2409_v45 = vpop.eup %2408  ;;  %v275_v50 = vmul.f32 %v2407_v43, %v2405_v41 }
 0x11f   :  { %v274_v49 = vmul.f32 0.0, %v2409_v45  ;;  %v2411_v55 = vpop.eup %2410 }
 0x121   :  { %v2915_v54 = vadd.f32 %v275_v50, %v274_v49 }
 0x123   :  { %2412 = vtanh.f32 %v2915_v54 }
 0x12d   :  { %v2413_v56 = vpop.eup %2412 }
 0x12e   :  { %v278_v59 = vmul.f32 %v2413_v56, %v2411_v55 }
 0x130   :  { %346 = vmatmul.mubr.f32.vlgmr.msra.gmra.mrb[2].mxu0 %v278_v59  ;;  %417 = vmatmul.mubr.f32.vlgmr.msra.gmra.mrb[2].mxu1 %v278_v59 }
 0x131   :  { %1988 = vmatpush1.bf16.msra.mxu0 %v2604_v9  ;;  %2020 = vmatpush1.bf16.msra.mxu1 %v2616_v13 }
 0x132   :  { %1990 = vmatprep.subr.bf16.mxu0 %v2629_v17  ;;  %2022 = vmatprep.subr.bf16.mxu1 %v2631_v18 }
 0x133   :  { %543 = vmatprep.mubr.f32.mxu0 %v2550_v7  ;;  %614 = vmatprep.mubr.f32.mxu1 %v2550_v7 }
 0x135   :  { %1992 = vmatpush1.bf16.msra.mxu0 %v2643_v22  ;;  %2024 = vmatpush1.bf16.msra.mxu1 %v2656_v26 }
 0x136   :  { %1994 = vmatprep.subr.bf16.mxu0 %v2658_v27  ;;  %2026 = vmatprep.subr.bf16.mxu1 %v2669_v31 }
 0x139   :  { %1996 = vmatpush1.bf16.msra.mxu0 %v2681_v35  ;;  %2028 = vmatpush1.bf16.msra.mxu1 %v2694_v39 }
 0x13a   :  { %1998 = vmatprep.subr.bf16.mxu0 %v2696_v40  ;;  %2030 = vmatprep.subr.bf16.mxu1 %v2708_v44 }
 0x13d   :  { %2000 = vmatpush1.bf16.msra.mxu0 %v2729_v51  ;;  %2032 = vmatpush1.bf16.msra.mxu1 %v2733_v52 }
 0x13e   :  { %2002 = vmatprep.subr.bf16.mxu0 %v2735_v53  ;;  %2034 = vmatprep.subr.bf16.mxu1 %v2747_v57 }
 0x141   :  { %2004 = vmatpush1.bf16.msra.mxu0 %v2765_v63  ;;  %2036 = vmatpush1.bf16.msra.mxu1 %v2769_v0 }
 0x142   :  { %2006 = vmatprep.subr.bf16.mxu0 %v2771_v1  ;;  %2038 = vmatprep.subr.bf16.mxu1 %v2783_v6 }
 0x145   :  { %2008 = vmatpush1.bf16.msra.mxu0 %v2801_v16  ;;  %2040 = vmatpush1.bf16.msra.mxu1 %v2808_v20 }
 0x146   :  { %2010 = vmatprep.subr.bf16.mxu0 %v2810_v21  ;;  %2042 = vmatprep.subr.bf16.mxu1 %v2819_v25 }
 0x149   :  { %2012 = vmatpush1.bf16.msra.mxu0 %v2837_v34  ;;  %2044 = vmatpush1.bf16.msra.mxu1 %v2841_v36 }
 0x14a   :  { %2014 = vmatprep.subr.bf16.mxu0 %v2843_v37  ;;  %2046 = vmatprep.subr.bf16.mxu1 %v2852_v42 }
 0x14d   :  { %2016 = vmatpush1.bf16.msra.mxu0 %v2861_v46  ;;  %2048 = vmatpush1.bf16.msra.mxu1 %v2865_v47 }
 0x14e   :  { %2050 = vmatprep.subr.bf16.mxu0 %v2589_v3  ;;  %2082 = vmatprep.subr.bf16.mxu1 %v2602_v8 }
 0x203   :  { %v347_v60 = vpop.f32.mrb[2].mxu0  ;;  %v418_v61 = vpop.f32.mrb[2].mxu1 }
 0x204   :  { %v349_v62 = vpop.f32.mrb[3].mxu0  ;;  %v420_v2 = vpop.f32.mrb[3].mxu1 }
 0x205   :  { %v427_v4 = vcombine.low %v347_v60, %v349_v62  ;;  %v428_v5 = vcombine.low %v418_v61, %v420_v2 }
 0x207   :  { %v435_v10 = vrot.slane %v427_v4, %v2908_v58  ;;  %v442_v11 = vrot.slane %v428_v5, %v2908_v58 }
 0x209   :  { %v443_v14 = vcombine.low %v435_v10, %v442_v11 }
 0x20b   :  { %v445_v15 = vadd.f32 %v1776_v12, %v443_v14 }
 0x20d   :  { %v1777_v19 = vmul.f32 -1.442695, %v445_v15  ;;  %v453_v23 = vrot.slane %v445_v15, 2  ;;  %v464_v28 = vrot.slane %v445_v15, 6  ;;  %v461_v32 = vrot.slane %v445_v15, 4  ;;  %v1780_v15 = vld [vmem:[%s3244_s0 + $0x10] sm:$0xff] }
 0x20f   :  { %2414 = vpow2.f32 %v1777_v19  ;;  %v1778_v24 = vmul.f32 -1.442695, %v453_v23  ;;  %v1779_v29 = vmul.f32 -1.442695, %v464_v28 }
 0x211   :  { %2416 = vpow2.f32 %v1778_v24 }
 0x212   :  { %2418 = vpow2.f32 %v1779_v29 }
 0x219   :  { %v2415_v30 = vpop.eup %2414 }
 0x21a   :  { %v449_v33 = vadd.f32 1.0, %v2415_v30 }
 0x21b   :  { %v2417_v38 = vpop.eup %2416 }
 0x21c   :  { %2420 = vrcp.f32 %v449_v33  ;;  %v458_v41 = vadd.f32 1.0, %v2417_v38  ;;  %v2419_v43 = vpop.eup %2418 }
 0x21d   :  { %2422 = vtanh.f32 %v461_v32  ;;  %v469_v50 = vadd.f32 1.0, %v2419_v43 }
 0x21e   :  { %2424 = vrcp.f32 %v458_v41 }
 0x21f   :  { %2426 = vrcp.f32 %v469_v50 }
 0x226   :  { %v2421_v45 = vpop.eup %2420 }
 0x227   :  { %v2423_v48 = vpop.eup %2422 }
 0x228   :  { %v2425_v49 = vpop.eup %2424  ;;  %v473_v56 = vmul.f32 %v2423_v48, %v2421_v45 }
 0x229   :  { %v472_v55 = vmul.f32 %v2425_v49, %v2915_v54  ;;  %v2427_v60 = vpop.eup %2426 }
 0x22b   :  { %v2958_v59 = vadd.f32 %v473_v56, %v472_v55 }
 0x22d   :  { %2428 = vtanh.f32 %v2958_v59 }
 0x237   :  { %v2429_v61 = vpop.eup %2428 }
 0x238   :  { %v476_v62 = vmul.f32 %v2429_v61, %v2427_v60 }
 0x23a   :  { %544 = vmatmul.mubr.f32.vlgmr.msra.gmra.mrb[4].mxu0 %v476_v62  ;;  %615 = vmatmul.mubr.f32.vlgmr.msra.gmra.mrb[4].mxu1 %v476_v62 }
 0x23b   :  { %2052 = vmatpush1.bf16.msra.mxu0 %v2604_v9  ;;  %2084 = vmatpush1.bf16.msra.mxu1 %v2616_v13 }
 0x23c   :  { %2054 = vmatprep.subr.bf16.mxu0 %v2629_v17  ;;  %2086 = vmatprep.subr.bf16.mxu1 %v2631_v18 }
 0x23d   :  { %741 = vmatprep.mubr.f32.mxu0 %v2550_v7  ;;  %812 = vmatprep.mubr.f32.mxu1 %v2550_v7 }
 0x23f   :  { %2056 = vmatpush1.bf16.msra.mxu0 %v2643_v22  ;;  %2088 = vmatpush1.bf16.msra.mxu1 %v2656_v26 }
 0x240   :  { %2058 = vmatprep.subr.bf16.mxu0 %v2658_v27  ;;  %2090 = vmatprep.subr.bf16.mxu1 %v2669_v31 }
 0x243   :  { %2060 = vmatpush1.bf16.msra.mxu0 %v2681_v35  ;;  %2092 = vmatpush1.bf16.msra.mxu1 %v2694_v39 }
 0x244   :  { %2062 = vmatprep.subr.bf16.mxu0 %v2696_v40  ;;  %2094 = vmatprep.subr.bf16.mxu1 %v2708_v44 }
 0x247   :  { %2064 = vmatpush1.bf16.msra.mxu0 %v2729_v51  ;;  %2096 = vmatpush1.bf16.msra.mxu1 %v2733_v52 }
 0x248   :  { %2066 = vmatprep.subr.bf16.mxu0 %v2735_v53  ;;  %2098 = vmatprep.subr.bf16.mxu1 %v2747_v57 }
 0x24b   :  { %2068 = vmatpush1.bf16.msra.mxu0 %v2765_v63  ;;  %2100 = vmatpush1.bf16.msra.mxu1 %v2769_v0 }
 0x24c   :  { %2070 = vmatprep.subr.bf16.mxu0 %v2771_v1  ;;  %2102 = vmatprep.subr.bf16.mxu1 %v2783_v6 }
 0x24f   :  { %2072 = vmatpush1.bf16.msra.mxu0 %v2801_v16  ;;  %2104 = vmatpush1.bf16.msra.mxu1 %v2808_v20 }
 0x250   :  { %2074 = vmatprep.subr.bf16.mxu0 %v2810_v21  ;;  %2106 = vmatprep.subr.bf16.mxu1 %v2819_v25 }
 0x253   :  { %2076 = vmatpush1.bf16.msra.mxu0 %v2837_v34  ;;  %2108 = vmatpush1.bf16.msra.mxu1 %v2841_v36 }
 0x254   :  { %2078 = vmatprep.subr.bf16.mxu0 %v2843_v37  ;;  %2110 = vmatprep.subr.bf16.mxu1 %v2852_v42 }
 0x257   :  { %2080 = vmatpush1.bf16.msra.mxu0 %v2861_v46  ;;  %2112 = vmatpush1.bf16.msra.mxu1 %v2865_v47 }
 0x258   :  { %2114 = vmatprep.subr.bf16.mxu0 %v2589_v3  ;;  %2146 = vmatprep.subr.bf16.mxu1 %v2602_v8 }
 0x30d   :  { %v545_v54 = vpop.f32.mrb[4].mxu0  ;;  %v616_v2 = vpop.f32.mrb[4].mxu1 }
 0x30e   :  { %v547_v4 = vpop.f32.mrb[5].mxu0  ;;  %v618_v5 = vpop.f32.mrb[5].mxu1 }
 0x30f   :  { %v625_v10 = vcombine.low %v545_v54, %v547_v4  ;;  %v626_v11 = vcombine.low %v616_v2, %v618_v5 }
 0x311   :  { %v633_v12 = vrot.slane %v625_v10, %v2908_v58  ;;  %v640_v14 = vrot.slane %v626_v11, %v2908_v58 }
 0x313   :  { %v641_v19 = vcombine.low %v633_v12, %v640_v14 }
 0x315   :  { %v643_v23 = vadd.f32 %v1780_v15, %v641_v19 }
 0x317   :  { %v1781_v24 = vmul.f32 -1.442695, %v643_v23  ;;  %v651_v28 = vrot.slane %v643_v23, 2  ;;  %v662_v30 = vrot.slane %v643_v23, 6  ;;  %v659_v38 = vrot.slane %v643_v23, 4  ;;  %v1784_v23 = vld [vmem:[%s3244_s0 + $0x18] sm:$0xff] }
 0x319   :  { %2430 = vpow2.f32 %v1781_v24  ;;  %v1782_v29 = vmul.f32 -1.442695, %v651_v28  ;;  %v1783_v32 = vmul.f32 -1.442695, %v662_v30 }
 0x31b   :  { %2432 = vpow2.f32 %v1782_v29 }
 0x31c   :  { %2434 = vpow2.f32 %v1783_v32 }
 0x323   :  { %v2431_v33 = vpop.eup %2430 }
 0x324   :  { %v647_v41 = vadd.f32 1.0, %v2431_v33 }
 0x325   :  { %v2433_v43 = vpop.eup %2432 }
 0x326   :  { %2436 = vrcp.f32 %v647_v41  ;;  %v656_v45 = vadd.f32 1.0, %v2433_v43  ;;  %v2435_v48 = vpop.eup %2434 }
 0x327   :  { %2438 = vtanh.f32 %v659_v38  ;;  %v667_v56 = vadd.f32 1.0, %v2435_v48 }
 0x328   :  { %2440 = vrcp.f32 %v656_v45 }
 0x329   :  { %2442 = vrcp.f32 %v667_v56 }
 0x330   :  { %v2437_v49 = vpop.eup %2436 }
 0x331   :  { %v2439_v50 = vpop.eup %2438 }
 0x332   :  { %v2441_v55 = vpop.eup %2440  ;;  %v671_v61 = vmul.f32 %v2439_v50, %v2437_v49 }
 0x333   :  { %v670_v60 = vmul.f32 %v2441_v55, %v2958_v59  ;;  %v2443_v54 = vpop.eup %2442 }
 0x335   :  { %v3001_v62 = vadd.f32 %v671_v61, %v670_v60 }
 0x337   :  { %2444 = vtanh.f32 %v3001_v62 }
 0x341   :  { %v2445_v2 = vpop.eup %2444 }
 0x342   :  { %v674_v4 = vmul.f32 %v2445_v2, %v2443_v54 }
 0x344   :  { %742 = vmatmul.mubr.f32.vlgmr.msra.gmra.mrb[6].mxu0 %v674_v4  ;;  %813 = vmatmul.mubr.f32.vlgmr.msra.gmra.mrb[6].mxu1 %v674_v4 }
 0x345   :  { %2116 = vmatpush1.bf16.msra.mxu0 %v2604_v9  ;;  %2148 = vmatpush1.bf16.msra.mxu1 %v2616_v13 }
 0x346   :  { %2118 = vmatprep.subr.bf16.mxu0 %v2629_v17  ;;  %2150 = vmatprep.subr.bf16.mxu1 %v2631_v18 }
 0x347   :  { %939 = vmatprep.mubr.f32.mxu0 %v2550_v7  ;;  %1010 = vmatprep.mubr.f32.mxu1 %v2550_v7 }
 0x349   :  { %2120 = vmatpush1.bf16.msra.mxu0 %v2643_v22  ;;  %2152 = vmatpush1.bf16.msra.mxu1 %v2656_v26 }
 0x34a   :  { %2122 = vmatprep.subr.bf16.mxu0 %v2658_v27  ;;  %2154 = vmatprep.subr.bf16.mxu1 %v2669_v31 }
 0x34d   :  { %2124 = vmatpush1.bf16.msra.mxu0 %v2681_v35  ;;  %2156 = vmatpush1.bf16.msra.mxu1 %v2694_v39 }
 0x34e   :  { %2126 = vmatprep.subr.bf16.mxu0 %v2696_v40  ;;  %2158 = vmatprep.subr.bf16.mxu1 %v2708_v44 }
 0x351   :  { %2128 = vmatpush1.bf16.msra.mxu0 %v2729_v51  ;;  %2160 = vmatpush1.bf16.msra.mxu1 %v2733_v52 }
 0x352   :  { %2130 = vmatprep.subr.bf16.mxu0 %v2735_v53  ;;  %2162 = vmatprep.subr.bf16.mxu1 %v2747_v57 }
 0x355   :  { %2132 = vmatpush1.bf16.msra.mxu0 %v2765_v63  ;;  %2164 = vmatpush1.bf16.msra.mxu1 %v2769_v0 }
 0x356   :  { %2134 = vmatprep.subr.bf16.mxu0 %v2771_v1  ;;  %2166 = vmatprep.subr.bf16.mxu1 %v2783_v6 }
 0x359   :  { %2136 = vmatpush1.bf16.msra.mxu0 %v2801_v16  ;;  %2168 = vmatpush1.bf16.msra.mxu1 %v2808_v20 }
 0x35a   :  { %2138 = vmatprep.subr.bf16.mxu0 %v2810_v21  ;;  %2170 = vmatprep.subr.bf16.mxu1 %v2819_v25 }
 0x35d   :  { %2140 = vmatpush1.bf16.msra.mxu0 %v2837_v34  ;;  %2172 = vmatpush1.bf16.msra.mxu1 %v2841_v36 }
 0x35e   :  { %2142 = vmatprep.subr.bf16.mxu0 %v2843_v37  ;;  %2174 = vmatprep.subr.bf16.mxu1 %v2852_v42 }
 0x361   :  { %2144 = vmatpush1.bf16.msra.mxu0 %v2861_v46  ;;  %2176 = vmatpush1.bf16.msra.mxu1 %v2865_v47 }
 0x362   :  { %2178 = vmatprep.subr.bf16.mxu0 %v2589_v3  ;;  %2210 = vmatprep.subr.bf16.mxu1 %v2602_v8 }
 0x417   :  { %v743_v59 = vpop.f32.mrb[6].mxu0  ;;  %v814_v5 = vpop.f32.mrb[6].mxu1 }
 0x418   :  { %v745_v10 = vpop.f32.mrb[7].mxu0  ;;  %v816_v11 = vpop.f32.mrb[7].mxu1 }
 0x419   :  { %v823_v12 = vcombine.low %v743_v59, %v745_v10  ;;  %v824_v14 = vcombine.low %v814_v5, %v816_v11 }
 0x41b   :  { %v831_v15 = vrot.slane %v823_v12, %v2908_v58  ;;  %v838_v19 = vrot.slane %v824_v14, %v2908_v58 }
 0x41d   :  { %v839_v24 = vcombine.low %v831_v15, %v838_v19 }
 0x41f   :  { %v841_v28 = vadd.f32 %v1784_v23, %v839_v24 }
 0x421   :  { %v1785_v29 = vmul.f32 -1.442695, %v841_v28  ;;  %v849_v30 = vrot.slane %v841_v28, 2  ;;  %v860_v33 = vrot.slane %v841_v28, 6  ;;  %v857_v43 = vrot.slane %v841_v28, 4  ;;  %v1788_v28 = vld [vmem:[%s3244_s0 + $0x20] sm:$0xff] }
 0x423   :  { %2446 = vpow2.f32 %v1785_v29  ;;  %v1786_v32 = vmul.f32 -1.442695, %v849_v30  ;;  %v1787_v38 = vmul.f32 -1.442695, %v860_v33 }
 0x425   :  { %2448 = vpow2.f32 %v1786_v32 }
 0x426   :  { %2450 = vpow2.f32 %v1787_v38 }
 0x42d   :  { %v2447_v41 = vpop.eup %2446 }
 0x42e   :  { %v845_v45 = vadd.f32 1.0, %v2447_v41 }
 0x42f   :  { %v2449_v48 = vpop.eup %2448 }
 0x430   :  { %2452 = vrcp.f32 %v845_v45  ;;  %v854_v49 = vadd.f32 1.0, %v2449_v48  ;;  %v2451_v50 = vpop.eup %2450 }
 0x431   :  { %2454 = vtanh.f32 %v857_v43  ;;  %v865_v61 = vadd.f32 1.0, %v2451_v50 }
 0x432   :  { %2456 = vrcp.f32 %v854_v49 }
 0x433   :  { %2458 = vrcp.f32 %v865_v61 }
 0x43a   :  { %v2453_v55 = vpop.eup %2452 }
 0x43b   :  { %v2455_v56 = vpop.eup %2454 }
 0x43c   :  { %v2457_v60 = vpop.eup %2456  ;;  %v869_v2 = vmul.f32 %v2455_v56, %v2453_v55 }
 0x43d   :  { %v868_v54 = vmul.f32 %v2457_v60, %v3001_v62  ;;  %v2459_v59 = vpop.eup %2458 }
 0x43f   :  { %v3044_v4 = vadd.f32 %v869_v2, %v868_v54 }
 0x441   :  { %2460 = vtanh.f32 %v3044_v4 }
 0x44b   :  { %v2461_v5 = vpop.eup %2460 }
 0x44c   :  { %v872_v10 = vmul.f32 %v2461_v5, %v2459_v59 }
 0x44e   :  { %940 = vmatmul.mubr.f32.vlgmr.msra.gmra.mrb[8].mxu0 %v872_v10  ;;  %1011 = vmatmul.mubr.f32.vlgmr.msra.gmra.mrb[8].mxu1 %v872_v10 }
 0x44f   :  { %2180 = vmatpush1.bf16.msra.mxu0 %v2604_v9  ;;  %2212 = vmatpush1.bf16.msra.mxu1 %v2616_v13 }
 0x450   :  { %2182 = vmatprep.subr.bf16.mxu0 %v2629_v17  ;;  %2214 = vmatprep.subr.bf16.mxu1 %v2631_v18 }
 0x451   :  { %1137 = vmatprep.mubr.f32.mxu0 %v2550_v7  ;;  %1208 = vmatprep.mubr.f32.mxu1 %v2550_v7 }
 0x453   :  { %2184 = vmatpush1.bf16.msra.mxu0 %v2643_v22  ;;  %2216 = vmatpush1.bf16.msra.mxu1 %v2656_v26 }
 0x454   :  { %2186 = vmatprep.subr.bf16.mxu0 %v2658_v27  ;;  %2218 = vmatprep.subr.bf16.mxu1 %v2669_v31 }
 0x457   :  { %2188 = vmatpush1.bf16.msra.mxu0 %v2681_v35  ;;  %2220 = vmatpush1.bf16.msra.mxu1 %v2694_v39 }
 0x458   :  { %2190 = vmatprep.subr.bf16.mxu0 %v2696_v40  ;;  %2222 = vmatprep.subr.bf16.mxu1 %v2708_v44 }
 0x45b   :  { %2192 = vmatpush1.bf16.msra.mxu0 %v2729_v51  ;;  %2224 = vmatpush1.bf16.msra.mxu1 %v2733_v52 }
 0x45c   :  { %2194 = vmatprep.subr.bf16.mxu0 %v2735_v53  ;;  %2226 = vmatprep.subr.bf16.mxu1 %v2747_v57 }
 0x45f   :  { %2196 = vmatpush1.bf16.msra.mxu0 %v2765_v63  ;;  %2228 = vmatpush1.bf16.msra.mxu1 %v2769_v0 }
 0x460   :  { %2198 = vmatprep.subr.bf16.mxu0 %v2771_v1  ;;  %2230 = vmatprep.subr.bf16.mxu1 %v2783_v6 }
 0x463   :  { %2200 = vmatpush1.bf16.msra.mxu0 %v2801_v16  ;;  %2232 = vmatpush1.bf16.msra.mxu1 %v2808_v20 }
 0x464   :  { %2202 = vmatprep.subr.bf16.mxu0 %v2810_v21  ;;  %2234 = vmatprep.subr.bf16.mxu1 %v2819_v25 }
 0x467   :  { %2204 = vmatpush1.bf16.msra.mxu0 %v2837_v34  ;;  %2236 = vmatpush1.bf16.msra.mxu1 %v2841_v36 }
 0x468   :  { %2206 = vmatprep.subr.bf16.mxu0 %v2843_v37  ;;  %2238 = vmatprep.subr.bf16.mxu1 %v2852_v42 }
 0x46b   :  { %2208 = vmatpush1.bf16.msra.mxu0 %v2861_v46  ;;  %2240 = vmatpush1.bf16.msra.mxu1 %v2865_v47 }
 0x46c   :  { %2242 = vmatprep.subr.bf16.mxu0 %v2589_v3  ;;  %2274 = vmatprep.subr.bf16.mxu1 %v2602_v8 }
 0x521   :  { %v941_v62 = vpop.f32.mrb[8].mxu0  ;;  %v1012_v11 = vpop.f32.mrb[8].mxu1 }
 0x522   :  { %v943_v12 = vpop.f32.mrb[9].mxu0  ;;  %v1014_v14 = vpop.f32.mrb[9].mxu1 }
 0x523   :  { %v1021_v15 = vcombine.low %v941_v62, %v943_v12  ;;  %v1022_v19 = vcombine.low %v1012_v11, %v1014_v14 }
 0x525   :  { %v1029_v23 = vrot.slane %v1021_v15, %v2908_v58  ;;  %v1036_v24 = vrot.slane %v1022_v19, %v2908_v58 }
 0x527   :  { %v1037_v29 = vcombine.low %v1029_v23, %v1036_v24 }
 0x529   :  { %v1039_v30 = vadd.f32 %v1788_v28, %v1037_v29 }
 0x52b   :  { %v1789_v32 = vmul.f32 -1.442695, %v1039_v30  ;;  %v1047_v33 = vrot.slane %v1039_v30, 2  ;;  %v1058_v41 = vrot.slane %v1039_v30, 6  ;;  %v1055_v48 = vrot.slane %v1039_v30, 4  ;;  %v1792_v30 = vld [vmem:[%s3244_s0 + $0x28] sm:$0xff] }
 0x52d   :  { %2462 = vpow2.f32 %v1789_v32  ;;  %v1790_v38 = vmul.f32 -1.442695, %v1047_v33  ;;  %v1791_v43 = vmul.f32 -1.442695, %v1058_v41 }
 0x52f   :  { %2464 = vpow2.f32 %v1790_v38 }
 0x530   :  { %2466 = vpow2.f32 %v1791_v43 }
 0x537   :  { %v2463_v45 = vpop.eup %2462 }
 0x538   :  { %v1043_v49 = vadd.f32 1.0, %v2463_v45 }
 0x539   :  { %v2465_v50 = vpop.eup %2464 }
 0x53a   :  { %2468 = vrcp.f32 %v1043_v49  ;;  %v1052_v55 = vadd.f32 1.0, %v2465_v50  ;;  %v2467_v56 = vpop.eup %2466 }
 0x53b   :  { %2470 = vtanh.f32 %v1055_v48  ;;  %v1063_v2 = vadd.f32 1.0, %v2467_v56 }
 0x53c   :  { %2472 = vrcp.f32 %v1052_v55 }
 0x53d   :  { %2474 = vrcp.f32 %v1063_v2 }
 0x544   :  { %v2469_v60 = vpop.eup %2468 }
 0x545   :  { %v2471_v61 = vpop.eup %2470 }
 0x546   :  { %v2473_v54 = vpop.eup %2472  ;;  %v1067_v5 = vmul.f32 %v2471_v61, %v2469_v60 }
 0x547   :  { %v1066_v59 = vmul.f32 %v2473_v54, %v3044_v4  ;;  %v2475_v62 = vpop.eup %2474 }
 0x549   :  { %v3087_v10 = vadd.f32 %v1067_v5, %v1066_v59 }
 0x54b   :  { %2476 = vtanh.f32 %v3087_v10 }
 0x555   :  { %v2477_v11 = vpop.eup %2476 }
 0x556   :  { %v1070_v12 = vmul.f32 %v2477_v11, %v2475_v62 }
 0x558   :  { %1138 = vmatmul.mubr.f32.vlgmr.msra.gmra.mrb[10].mxu0 %v1070_v12  ;;  %1209 = vmatmul.mubr.f32.vlgmr.msra.gmra.mrb[10].mxu1 %v1070_v12 }
 0x559   :  { %2244 = vmatpush1.bf16.msra.mxu0 %v2604_v9  ;;  %2276 = vmatpush1.bf16.msra.mxu1 %v2616_v13 }
 0x55a   :  { %2246 = vmatprep.subr.bf16.mxu0 %v2629_v17  ;;  %2278 = vmatprep.subr.bf16.mxu1 %v2631_v18 }
 0x55b   :  { %1335 = vmatprep.mubr.f32.mxu0 %v2550_v7  ;;  %1406 = vmatprep.mubr.f32.mxu1 %v2550_v7 }
 0x55d   :  { %2248 = vmatpush1.bf16.msra.mxu0 %v2643_v22  ;;  %2280 = vmatpush1.bf16.msra.mxu1 %v2656_v26 }
 0x55e   :  { %2250 = vmatprep.subr.bf16.mxu0 %v2658_v27  ;;  %2282 = vmatprep.subr.bf16.mxu1 %v2669_v31 }
 0x561   :  { %2252 = vmatpush1.bf16.msra.mxu0 %v2681_v35  ;;  %2284 = vmatpush1.bf16.msra.mxu1 %v2694_v39 }
 0x562   :  { %2254 = vmatprep.subr.bf16.mxu0 %v2696_v40  ;;  %2286 = vmatprep.subr.bf16.mxu1 %v2708_v44 }
 0x565   :  { %2256 = vmatpush1.bf16.msra.mxu0 %v2729_v51  ;;  %2288 = vmatpush1.bf16.msra.mxu1 %v2733_v52 }
 0x566   :  { %2258 = vmatprep.subr.bf16.mxu0 %v2735_v53  ;;  %2290 = vmatprep.subr.bf16.mxu1 %v2747_v57 }
 0x569   :  { %2260 = vmatpush1.bf16.msra.mxu0 %v2765_v63  ;;  %2292 = vmatpush1.bf16.msra.mxu1 %v2769_v0 }
 0x56a   :  { %2262 = vmatprep.subr.bf16.mxu0 %v2771_v1  ;;  %2294 = vmatprep.subr.bf16.mxu1 %v2783_v6 }
 0x56d   :  { %2264 = vmatpush1.bf16.msra.mxu0 %v2801_v16  ;;  %2296 = vmatpush1.bf16.msra.mxu1 %v2808_v20 }
 0x56e   :  { %2266 = vmatprep.subr.bf16.mxu0 %v2810_v21  ;;  %2298 = vmatprep.subr.bf16.mxu1 %v2819_v25 }
 0x571   :  { %2268 = vmatpush1.bf16.msra.mxu0 %v2837_v34  ;;  %2300 = vmatpush1.bf16.msra.mxu1 %v2841_v36 }
 0x572   :  { %2270 = vmatprep.subr.bf16.mxu0 %v2843_v37  ;;  %2302 = vmatprep.subr.bf16.mxu1 %v2852_v42 }
 0x575   :  { %2272 = vmatpush1.bf16.msra.mxu0 %v2861_v46  ;;  %2304 = vmatpush1.bf16.msra.mxu1 %v2865_v47 }
 0x576   :  { %2306 = vmatprep.subr.bf16.mxu0 %v2589_v3  ;;  %2338 = vmatprep.subr.bf16.mxu1 %v2602_v8 }
 0x62b   :  { %v1139_v4 = vpop.f32.mrb[10].mxu0  ;;  %v1210_v14 = vpop.f32.mrb[10].mxu1 }
 0x62c   :  { %v1141_v15 = vpop.f32.mrb[11].mxu0  ;;  %v1212_v19 = vpop.f32.mrb[11].mxu1 }
 0x62d   :  { %v1219_v23 = vcombine.low %v1139_v4, %v1141_v15  ;;  %v1220_v24 = vcombine.low %v1210_v14, %v1212_v19  ;;  %v1665_v15 = vld [vmem:[%s3246_s2] sm:$0xff]  ;;  %v1666_v19 = vld [vmem:[%s3246_s2 + $0x8] sm:$0xff] }
 0x62f   :  { %v1227_v28 = vrot.slane %v1219_v23, %v2908_v58  ;;  %v1234_v29 = vrot.slane %v1220_v24, %v2908_v58  ;;  %v2370_v23 = vpack.c.bf16 %v1666_v19, %v1665_v15  ;;  %v2552_v24 = vmov 0.0|0.0  }
 0x631   :  { %v1235_v32 = vcombine.low %v1227_v28, %v1234_v29  ;;  %v1667_v28 = vld [vmem:[%s3246_s2 + $0x10] sm:$0xff]  ;;  %v1668_v29 = vld [vmem:[%s3246_s2 + $0x18] sm:$0xff] }
 0x633   :  { %v1237_v33 = vadd.f32 %v1792_v30, %v1235_v32  ;;  %v2373_v30 = vpack.c.bf16 %v1668_v29, %v1667_v28  ;;  %v1669_v32 = vld [vmem:[%s3246_s2 + $0x20] sm:$0xff] }
 0x635   :  { %v1793_v38 = vmul.f32 -1.442695, %v1237_v33  ;;  %v1245_v3 = vrot.slane %v1237_v33, 2  ;;  %v1256_v41 = vrot.slane %v1237_v33, 6  ;;  %v1253_v48 = vrot.slane %v1237_v33, 4  ;;  %v1670_v33 = vld [vmem:[%s3246_s2 + $0x28] sm:$0xff] }
 0x637   :  { %2478 = vpow2.f32 %v1793_v38  ;;  %v1794_v8 = vmul.f32 -1.442695, %v1245_v3  ;;  %v1795_v43 = vmul.f32 -1.442695, %v1256_v41  ;;  %v2376_v38 = vpack.c.bf16 %v1670_v33, %v1669_v32  ;;  %v1671_v3 = vld [vmem:[%s3246_s2 + $0x30] sm:$0xff] }
 0x639   :  { %2480 = vpow2.f32 %v1794_v8  ;;  %v1672_v8 = vld [vmem:[%s3246_s2 + $0x38] sm:$0xff] }
 0x63a   :  { %2482 = vpow2.f32 %v1795_v43  ;;  %v2379_v41 = vpack.c.bf16 %v1672_v8, %v1671_v3  ;;  %v1673_v43 = vld [vmem:[%s3246_s2 + $0x40] sm:$0xff] }
 0x641   :  { %v2479_v45 = vpop.eup %2478 }
 0x642   :  { %v1241_v49 = vadd.f32 1.0, %v2479_v45 }
 0x643   :  { %v2481_v50 = vpop.eup %2480 }
 0x644   :  { %2484 = vrcp.f32 %v1241_v49  ;;  %v1250_v55 = vadd.f32 1.0, %v2481_v50  ;;  %v2483_v56 = vpop.eup %2482  ;;  %v1676_v49 = vld [vmem:[%s3246_s2 + $0x58] sm:$0xff] }
 0x645   :  { %2486 = vtanh.f32 %v1253_v48  ;;  %v1261_v2 = vadd.f32 1.0, %v2483_v56  ;;  %v1675_v48 = vld [vmem:[%s3246_s2 + $0x50] sm:$0xff]  ;;  %v1678_v56 = vld [vmem:[%s3246_s2 + $0x68] sm:$0xff] }
 0x646   :  { %2488 = vrcp.f32 %v1250_v55  ;;  %v2385_v50 = vpack.c.bf16 %v1676_v49, %v1675_v48  ;;  %v1677_v55 = vld [vmem:[%s3246_s2 + $0x60] sm:$0xff] }
 0x647   :  { %2490 = vrcp.f32 %v1261_v2 }
 0x64e   :  { %v2485_v60 = vpop.eup %2484 }
 0x64f   :  { %v2487_v61 = vpop.eup %2486 }
 0x650   :  { %v2489_v54 = vpop.eup %2488  ;;  %v1265_v5 = vmul.f32 %v2487_v61, %v2485_v60  ;;  %v2388_v60 = vpack.c.bf16 %v1678_v56, %v1677_v55  ;;  %v1679_v61 = vld [vmem:[%s3246_s2 + $0x70] sm:$0xff] }
 0x651   :  { %v1264_v59 = vmul.f32 %v2489_v54, %v3087_v10  ;;  %v2491_v11 = vpop.eup %2490  ;;  %v1680_v54 = vld [vmem:[%s3246_s2 + $0x78] sm:$0xff] }
 0x652   :  { %v2391_v2 = vpack.c.bf16 %v1680_v54, %v1679_v61 }
 0x653   :  { %v3130_v62 = vadd.f32 %v1265_v5, %v1264_v59 }
 0x655   :  { %2492 = vtanh.f32 %v3130_v62 }
 0x65f   :  { %v2493_v12 = vpop.eup %2492 }
 0x660   :  { %v1268_v4 = vmul.f32 %v2493_v12, %v2491_v11 }
 0x662   :  { %1336 = vmatmul.mubr.f32.vlgmr.msra.gmra.mrb[12].mxu0 %v1268_v4  ;;  %1407 = vmatmul.mubr.f32.vlgmr.msra.gmra.mrb[12].mxu1 %v1268_v4 }
 0x663   :  { %2308 = vmatpush1.bf16.msra.mxu0 %v2604_v9  ;;  %2340 = vmatpush1.bf16.msra.mxu1 %v2616_v13 }
 0x664   :  { %2310 = vmatprep.subr.bf16.mxu0 %v2629_v17  ;;  %2342 = vmatprep.subr.bf16.mxu1 %v2631_v18 }
 0x665   :  { %1533 = vmatprep.mubr.f32.mxu0 %v2550_v7  ;;  %1604 = vmatprep.mubr.f32.mxu1 %v2550_v7 }
 0x667   :  { %2312 = vmatpush1.bf16.msra.mxu0 %v2643_v22  ;;  %2344 = vmatpush1.bf16.msra.mxu1 %v2656_v26 }
 0x668   :  { %2314 = vmatprep.subr.bf16.mxu0 %v2658_v27  ;;  %2346 = vmatprep.subr.bf16.mxu1 %v2669_v31 }
 0x66b   :  { %2316 = vmatpush1.bf16.msra.mxu0 %v2681_v35  ;;  %2348 = vmatpush1.bf16.msra.mxu1 %v2694_v39  ;;  %v1796_v35 = vld [vmem:[%s3244_s0 + $0x30] sm:$0xff] }
 0x66c   :  { %2318 = vmatprep.subr.bf16.mxu0 %v2696_v40  ;;  %2350 = vmatprep.subr.bf16.mxu1 %v2708_v44 }
 0x66f   :  { %2320 = vmatpush1.bf16.msra.mxu0 %v2729_v51  ;;  %2352 = vmatpush1.bf16.msra.mxu1 %v2733_v52 }
 0x670   :  { %2322 = vmatprep.subr.bf16.mxu0 %v2735_v53  ;;  %2354 = vmatprep.subr.bf16.mxu1 %v2747_v57 }
 0x673   :  { %2324 = vmatpush1.bf16.msra.mxu0 %v2765_v63  ;;  %2356 = vmatpush1.bf16.msra.mxu1 %v2769_v0 }
 0x674   :  { %2326 = vmatprep.subr.bf16.mxu0 %v2771_v1  ;;  %2358 = vmatprep.subr.bf16.mxu1 %v2783_v6 }
 0x677   :  { %2328 = vmatpush1.bf16.msra.mxu0 %v2801_v16  ;;  %2360 = vmatpush1.bf16.msra.mxu1 %v2808_v20 }
 0x678   :  { %2330 = vmatprep.subr.bf16.mxu0 %v2810_v21  ;;  %2362 = vmatprep.subr.bf16.mxu1 %v2819_v25 }
 0x67b   :  { %2332 = vmatpush1.bf16.msra.mxu0 %v2837_v34  ;;  %2364 = vmatpush1.bf16.msra.mxu1 %v2841_v36 }
 0x67c   :  { %2334 = vmatprep.subr.bf16.mxu0 %v2843_v37  ;;  %2366 = vmatprep.subr.bf16.mxu1 %v2852_v42 }
 0x67f   :  { %2336 = vmatpush1.bf16.msra.mxu0 %v2861_v46  ;;  %2368 = vmatpush1.bf16.msra.mxu1 %v2865_v47 }
 0x680   :  { %2369 = vmatprep.subr.bf16.mxu0 %v2552_v24 }
 0x735   :  { %v1337_v9 = vpop.f32.mrb[12].mxu0  ;;  %v1408_v13 = vpop.f32.mrb[12].mxu1 }
 0x736   :  { %v1339_v17 = vpop.f32.mrb[13].mxu0  ;;  %v1410_v18 = vpop.f32.mrb[13].mxu1 }
 0x737   :  { %v1417_v22 = vcombine.low %v1337_v9, %v1339_v17  ;;  %v1418_v26 = vcombine.low %v1408_v13, %v1410_v18  ;;  %v1800_v17 = vld [vmem:[%s3244_s0 + $0x38] sm:$0xff] }
 0x739   :  { %v1425_v27 = vrot.slane %v1417_v22, %v2908_v58  ;;  %v1432_v31 = vrot.slane %v1418_v26, %v2908_v58 }
 0x73b   :  { %v1433_v39 = vcombine.low %v1425_v27, %v1432_v31 }
 0x73d   :  { %v1435_v40 = vadd.f32 %v1796_v35, %v1433_v39 }
 0x73f   :  { %v1797_v44 = vmul.f32 -1.442695, %v1435_v40  ;;  %v1443_v51 = vrot.slane %v1435_v40, 2  ;;  %v1454_v53 = vrot.slane %v1435_v40, 6  ;;  %v1451_v0 = vrot.slane %v1435_v40, 4 }
 0x741   :  { %2494 = vpow2.f32 %v1797_v44  ;;  %v1798_v52 = vmul.f32 -1.442695, %v1443_v51  ;;  %v1799_v57 = vmul.f32 -1.442695, %v1454_v53 }
 0x743   :  { %2496 = vpow2.f32 %v1798_v52 }
 0x744   :  { %2498 = vpow2.f32 %v1799_v57 }
 0x74b   :  { %v2495_v63 = vpop.eup %2494 }
 0x74c   :  { %v1439_v1 = vadd.f32 1.0, %v2495_v63 }
 0x74d   :  { %v2497_v6 = vpop.eup %2496 }
 0x74e   :  { %2500 = vrcp.f32 %v1439_v1  ;;  %v1448_v16 = vadd.f32 1.0, %v2497_v6  ;;  %v2499_v20 = vpop.eup %2498 }
 0x74f   :  { %2502 = vtanh.f32 %v1451_v0  ;;  %v1459_v36 = vadd.f32 1.0, %v2499_v20 }
 0x750   :  { %2504 = vrcp.f32 %v1448_v16 }
 0x751   :  { %2506 = vrcp.f32 %v1459_v36  ;;  %v1804_v36 = vld [vmem:[%s3247_s3] ss:$0 sm:$0xff] }
 0x758   :  { %v2501_v21 = vpop.eup %2500 }
 0x759   :  { %v2503_v25 = vpop.eup %2502 }
 0x75a   :  { %v2505_v34 = vpop.eup %2504  ;;  %v1463_v42 = vmul.f32 %v2503_v25, %v2501_v21 }
 0x75b   :  { %v1462_v37 = vmul.f32 %v2505_v34, %v3130_v62  ;;  %v2507_v47 = vpop.eup %2506 }
 0x75d   :  { %v3171_v46 = vadd.f32 %v1463_v42, %v1462_v37 }
 0x75f   :  { %2508 = vtanh.f32 %v3171_v46 }
 0x769   :  { %v2509_v10 = vpop.eup %2508 }
 0x76a   :  { %v1466_v14 = vmul.f32 %v2509_v10, %v2507_v47 }
 0x76c   :  { %1534 = vmatmul.mubr.f32.vlgmr.msra.gmra.mrb[14].mxu0 %v1466_v14  ;;  %1605 = vmatmul.mubr.f32.vlgmr.msra.gmra.mrb[14].mxu1 %v1466_v14 }
 0x76d   :  { %2371 = vmatpush3.bf16.msra.mxu0 %v2370_v23  ;;  %1854 = vmatprep.mubr.msk.f32.mxu0 %vm2553_vm0, %v2550_v7  ;;  %v1674_v7 = vld [vmem:[%s3246_s2 + $0x48] sm:$0xff] }
 0x76e   :  { %2372 = vmatprep.subr.bf16.mxu0 %v2552_v24  ;;  %v2382_v45 = vpack.c.bf16 %v1674_v7, %v1673_v43 }
 0x771   :  { %2374 = vmatpush3.bf16.msra.mxu0 %v2373_v30 }
 0x772   :  { %2375 = vmatprep.subr.bf16.mxu0 %v2552_v24 }
 0x775   :  { %2377 = vmatpush3.bf16.msra.mxu0 %v2376_v38 }
 0x776   :  { %2378 = vmatprep.subr.bf16.mxu0 %v2552_v24 }
 0x779   :  { %2380 = vmatpush3.bf16.msra.mxu0 %v2379_v41 }
 0x77a   :  { %2381 = vmatprep.subr.bf16.mxu0 %v2552_v24 }
 0x77d   :  { %2383 = vmatpush3.bf16.msra.mxu0 %v2382_v45 }
 0x77e   :  { %2384 = vmatprep.subr.bf16.mxu0 %v2552_v24 }
 0x781   :  { %2386 = vmatpush3.bf16.msra.mxu0 %v2385_v50 }
 0x782   :  { %2387 = vmatprep.subr.bf16.mxu0 %v2552_v24 }
 0x785   :  { %2389 = vmatpush3.bf16.msra.mxu0 %v2388_v60 }
 0x786   :  { %2390 = vmatprep.subr.bf16.mxu0 %v2552_v24 }
 0x789   :  { %2392 = vmatpush3.bf16.msra.mxu0 %v2391_v2 }
 0x83f   :  { %v1535_v59 = vpop.f32.mrb[14].mxu0  ;;  %v1606_v5 = vpop.f32.mrb[14].mxu1 }
 0x840   :  { %v1537_v62 = vpop.f32.mrb[15].mxu0  ;;  %v1608_v11 = vpop.f32.mrb[15].mxu1 }
 0x841   :  { %v1615_v12 = vcombine.low %v1535_v59, %v1537_v62  ;;  %v1616_v4 = vcombine.low %v1606_v5, %v1608_v11 }
 0x843   :  { %v1623_v9 = vrot.slane %v1615_v12, %v2908_v58  ;;  %v1630_v13 = vrot.slane %v1616_v4, %v2908_v58 }
 0x845   :  { %v1631_v18 = vcombine.low %v1623_v9, %v1630_v13 }
 0x847   :  { %v1633_v22 = vadd.f32 %v1800_v17, %v1631_v18 }
 0x849   :  { %v1801_v26 = vmul.f32 -1.442695, %v1633_v22  ;;  %v1641_v27 = vrot.slane %v1633_v22, 2  ;;  %v1652_v35 = vrot.slane %v1633_v22, 6  ;;  %v1649_v44 = vrot.slane %v1633_v22, 4 }
 0x84b   :  { %2510 = vpow2.f32 %v1801_v26  ;;  %v1802_v31 = vmul.f32 -1.442695, %v1641_v27  ;;  %v1803_v39 = vmul.f32 -1.442695, %v1652_v35 }
 0x84d   :  { %2512 = vpow2.f32 %v1802_v31 }
 0x84e   :  { %2514 = vpow2.f32 %v1803_v39 }
 0x855   :  { %v2511_v40 = vpop.eup %2510 }
 0x856   :  { %v1637_v51 = vadd.f32 1.0, %v2511_v40 }
 0x857   :  { %v2513_v52 = vpop.eup %2512 }
 0x858   :  { %2516 = vrcp.f32 %v1637_v51  ;;  %v1646_v58 = vadd.f32 1.0, %v2513_v52  ;;  %v2515_v53 = vpop.eup %2514 }
 0x859   :  { %2518 = vtanh.f32 %v1649_v44  ;;  %v1657_v1 = vadd.f32 1.0, %v2515_v53 }
 0x85a   :  { %2520 = vrcp.f32 %v1646_v58 }
 0x85b   :  { %2522 = vrcp.f32 %v1657_v1 }
 0x862   :  { %v2517_v57 = vpop.eup %2516 }
 0x863   :  { %v2519_v63 = vpop.eup %2518 }
 0x864   :  { %v2521_v0 = vpop.eup %2520  ;;  %v1661_v16 = vmul.f32 %v2519_v63, %v2517_v57 }
 0x865   :  { %v1660_v6 = vmul.f32 %v2521_v0, %v3171_v46  ;;  %v2523_v21 = vpop.eup %2522 }
 0x867   :  { %v1662_v20 = vadd.f32 %v1661_v16, %v1660_v6 }
 0x869   :  { %2524 = vtanh.f32 %v1662_v20 }
 0x873   :  { %v2525_v25 = vpop.eup %2524 }
 0x874   :  { %v1664_v34 = vmul.f32 %v2525_v25, %v2523_v21 }
 0x876   :  { %1855 = vmatmul.mubr.f32.vlgmr.msra.gmra.mrb[16].mxu0 %v1664_v34 }
 0x949   :  { %v1754_v37 = vpop.f32.mrb[16].mxu0 }
 0x94a   :  { %v1755_v42 = vadd.f32 %v1804_v36, %v1754_v37  ;;  %v1856_v47 = vpop.f32.mrb[17].mxu0 }
 0x94c   :  { %1758 = vst [vmem:[#allocation2] sm:$0x3] %v1755_v42 }
 0x94d   :  { %2537 = shalt.err (!%p2534_p4)
}
 0x94e   :  { %s2538_s12 = scalar_lea.hbm %s3248_s4, 32 }
 0x94f   :  { %p2539_p5 = scmp.ne.s32.totalorder %s3248_s4, %s2538_s12  ;;  %p2542_p6 = scmp.lt.u32.totalorder %s2538_s12, %s3248_s4 }
 0x951   :  { %p2544_p7 = pnand %p2542_p6, %p2539_p5 }
 0x953   :  { %2547 = shalt.err (!%p2544_p7)
}
 0x954   :  { %1768 = dma.vmem_to_hbm [thread:$0]  %s1766_s8, 32, %s3248_s4, [#allocation3]  }
 0x955   :  { %2548 = dma.done.wait [#allocation3], 32  }
 0x956   :  { %2549 = vsyncadd [#allocation3], 4294967264 }
 0x957   :  { %1772 = vsyncpa [#allocation3], 1 }

</bundles_post_ra>
